<compile_context>
chip_gen: v5e
topology: v5e:2x2
jax: 0.10.0
libtpu: 0.0.40
codegen_flags: <defaults>
</compile_context>

<pallas_src>
import functools

import jax
import jax.numpy as jnp
from jax.experimental import pallas as pl
from jax.experimental.pallas import tpu as pltpu

BN_EPS = 1e-5
LEAKY_SLOPE = 0.01      # F.leaky_relu default negative_slope
C_PAD = 128             # conv output channels padded 32 -> 128 (lane-dense)
HIDDEN = 100
HIDDEN_PAD = 128        # MLP hidden padded 100 -> 128 (lane-dense)


def _round_up(x, m):
    return ((x + m - 1) // m) * m


# ---------------------------------------------------------------------------
# Pallas kernels
# ---------------------------------------------------------------------------
def conv_gemm_kernel(p_ref, w_ref, b_ref, o_ref):
    """Fused (im2col patches @ BN-folded conv weights) + bias -> LeakyReLU.

    p_ref: (TM, K)       bf16 patch tile          (M axis tiled over the grid)
    w_ref: (K, C_PAD)    bf16 folded weights      (resident: index_map = (0,0))
    b_ref: (1, C_PAD)    f32  folded bias
    o_ref: (TM, C_PAD)   bf16 output tile (padded channels stay exactly 0)
    """
    y = jnp.dot(p_ref[...], w_ref[...], preferred_element_type=jnp.float32)
    y = y + b_ref[...]
    y = jnp.where(y > 0, y, LEAKY_SLOPE * y)
    o_ref[...] = y.astype(o_ref.dtype)


def mlp_kernel(x_ref, w1_ref, b1_ref, w2_ref, b2_ref, w3_ref, b3_ref, o_ref):
    """Fused Linear->ReLU->Linear->ReLU->Linear (Dropout = identity in eval).

    All weights bf16 (padded to 128 lanes), biases f32, f32 accumulation.
    """
    h = jnp.dot(x_ref[...], w1_ref[...], preferred_element_type=jnp.float32)
    h = jnp.maximum(h + b1_ref[...], 0.0)
    h = jnp.dot(h.astype(jnp.bfloat16), w2_ref[...],
                preferred_element_type=jnp.float32)
    h = jnp.maximum(h + b2_ref[...], 0.0)
    y = jnp.dot(h.astype(jnp.bfloat16), w3_ref[...],
                preferred_element_type=jnp.float32)
    o_ref[...] = y + b3_ref[...]


# ---------------------------------------------------------------------------
# Layer wrappers (im2col / padding glue in JAX, hot path in Pallas)
# ---------------------------------------------------------------------------
def conv_bn_lrelu(x_nhwc, wmat, bias, *, ksize=4, stride=2):
    """x_nhwc: (N,H,W,Cany) bf16 (only the first `cin` channels are real)."""
    N, H, W, _ = x_nhwc.shape
    K, cout_pad = wmat.shape
    cin = K // (ksize * ksize)
    OH = (H - ksize) // stride + 1
    OW = (W - ksize) // stride + 1

    # im2col: feature index = ((kh*KW + kw)*Cin + c), matching the reshape of
    # the HWIO weights in prepare_params.
    cols = []
    for kh in range(ksize):
        for kw in range(ksize):
            cols.append(x_nhwc[:, kh:kh + stride * OH:stride,
                               kw:kw + stride * OW:stride, :cin])
    patches = jnp.concatenate(cols, axis=-1).reshape(N * OH * OW, K)
    patches = patches.astype(jnp.bfloat16)

    M = N * OH * OW
    TM = min(512, _round_up(M, 8))          # tile over M; multiple of 8
    M_pad = _round_up(M, TM)
    if M_pad != M:
        patches = jnp.pad(patches, ((0, M_pad - M), (0, 0)))

    out = pl.pallas_call(
        conv_gemm_kernel,
        out_shape=jax.ShapeDtypeStruct((M_pad, cout_pad), jnp.bfloat16),
        grid=(M_pad // TM,),
        in_specs=[
            pl.BlockSpec((TM, K), lambda i: (i, 0)),        # streamed patches
            pl.BlockSpec((K, cout_pad), lambda i: (0, 0)),  # resident weights
            pl.BlockSpec((1, cout_pad), lambda i: (0, 0)),  # resident bias
        ],
        out_specs=pl.BlockSpec((TM, cout_pad), lambda i: (i, 0)),
        compiler_params=pltpu.CompilerParams(
            dimension_semantics=("parallel",)),
    )(patches, wmat, bias)
    return out[:M].reshape(N, OH, OW, cout_pad)


def mlp_head(flat, w1, b1, w2, b2, w3, b3):
    """flat: (N, D) bf16 with D a multiple of 128 (padded channels already 0)."""
    N, D = flat.shape
    HP = w1.shape[1]
    OP = w3.shape[1]

    TN = min(256, _round_up(N, 8))
    N_pad = _round_up(N, TN)
    if N_pad != N:
        flat = jnp.pad(flat, ((0, N_pad - N), (0, 0)))

    out = pl.pallas_call(
        mlp_kernel,
        out_shape=jax.ShapeDtypeStruct((N_pad, OP), jnp.float32),
        grid=(N_pad // TN,),
        in_specs=[
            pl.BlockSpec((TN, D), lambda i: (i, 0)),
            pl.BlockSpec((D, HP), lambda i: (0, 0)),
            pl.BlockSpec((1, HP), lambda i: (0, 0)),
            pl.BlockSpec((HP, HP), lambda i: (0, 0)),
            pl.BlockSpec((1, HP), lambda i: (0, 0)),
            pl.BlockSpec((HP, OP), lambda i: (0, 0)),
            pl.BlockSpec((1, OP), lambda i: (0, 0)),
        ],
        out_specs=pl.BlockSpec((TN, OP), lambda i: (i, 0)),
        compiler_params=pltpu.CompilerParams(
            dimension_semantics=("parallel",)),
    )(flat, w1, b1, w2, b2, w3, b3)
    return out[:N]


# ---------------------------------------------------------------------------
# Parameters (PyTorch-like parameterization) and offline preparation
# ---------------------------------------------------------------------------
def _conv_out(s):
    return (s - 4) // 2 + 1


def init_params(key, image_height, image_width, out_dims):
    oh = _conv_out(_conv_out(_conv_out(image_height)))
    ow = _conv_out(_conv_out(_conv_out(image_width)))
    lin_in = oh * ow * 32

    keys = jax.random.split(key, 16)
    p = {}

    def conv_block(i, cin, cout, k_w, k_b, k_g, k_beta, k_mu, k_var):
        fan_in = cin * 4 * 4
        p[f"conv{i}_w"] = (jax.random.normal(k_w, (4, 4, cin, cout),
                                             jnp.float32)
                           / jnp.sqrt(fan_in))
        p[f"conv{i}_b"] = 0.1 * jax.random.normal(k_b, (cout,), jnp.float32)
        p[f"bn{i}_gamma"] = 1.0 + 0.1 * jax.random.normal(
            k_g, (cout,), jnp.float32)
        p[f"bn{i}_beta"] = 0.1 * jax.random.normal(k_beta, (cout,), jnp.float32)
        p[f"bn{i}_mean"] = 0.1 * jax.random.normal(k_mu, (cout,), jnp.float32)
        p[f"bn{i}_var"] = 0.5 + jax.random.uniform(k_var, (cout,), jnp.float32)

    conv_block(1, 3, 32, *jax.random.split(keys[0], 6))
    conv_block(2, 32, 32, *jax.random.split(keys[1], 6))
    conv_block(3, 32, 32, *jax.random.split(keys[2], 6))

    def lin(kw, kb, din, dout):
        w = jax.random.normal(kw, (din, dout), jnp.float32) / jnp.sqrt(din)
        b = 0.1 * jax.random.normal(kb, (dout,), jnp.float32)
        return w, b

    # ff1_w rows follow torch.flatten(NCHW) ordering: index = c*OH*OW + h*OW + w
    p["ff1_w"], p["ff1_b"] = lin(keys[3], keys[4], lin_in, HIDDEN)
    p["ff2_w"], p["ff2_b"] = lin(keys[5], keys[6], HIDDEN, HIDDEN)
    p["ff3_w"], p["ff3_b"] = lin(keys[7], keys[8], HIDDEN, out_dims)
    return p


def prepare_params(params, image_height, image_width, out_dims):
    """One-time offline transform: fold BN, pad to lane-dense widths, cast bf16,
    and fold the NCHW-flatten permutation + channel padding into ff1_w rows."""
    oh = _conv_out(_conv_out(_conv_out(image_height)))
    ow = _conv_out(_conv_out(_conv_out(image_width)))
    prep = {}

    for i, cin in ((1, 3), (2, 32), (3, 32)):
        w = params[f"conv{i}_w"]                     # (4,4,cin,32) HWIO
        scale = params[f"bn{i}_gamma"] * jax.lax.rsqrt(
            params[f"bn{i}_var"] + BN_EPS)
        wf = (w * scale).reshape(4 * 4 * cin, 32)
        bf = (params[f"conv{i}_b"] - params[f"bn{i}_mean"]) * scale \
            + params[f"bn{i}_beta"]
        prep[f"conv{i}_w"] = jnp.pad(
            wf, ((0, 0), (0, C_PAD - 32))).astype(jnp.bfloat16)
        prep[f"conv{i}_b"] = jnp.pad(
            bf, (0, C_PAD - 32)).reshape(1, C_PAD).astype(jnp.float32)

    # ff1: NCHW-row ordering -> NHWC(-padded) row ordering, pad hidden 100->128.
    w1 = params["ff1_w"].reshape(32, oh, ow, HIDDEN)
    w1 = jnp.transpose(w1, (1, 2, 0, 3))             # (oh, ow, C, hidden)
    w1 = jnp.pad(w1, ((0, 0), (0, 0), (0, C_PAD - 32),
                      (0, HIDDEN_PAD - HIDDEN)))
    prep["ff1_w"] = w1.reshape(oh * ow * C_PAD, HIDDEN_PAD).astype(jnp.bfloat16)
    prep["ff1_b"] = jnp.pad(params["ff1_b"], (0, HIDDEN_PAD - HIDDEN)) \
        .reshape(1, HIDDEN_PAD).astype(jnp.float32)

    prep["ff2_w"] = jnp.pad(params["ff2_w"],
                            ((0, HIDDEN_PAD - HIDDEN),
                             (0, HIDDEN_PAD - HIDDEN))).astype(jnp.bfloat16)
    prep["ff2_b"] = jnp.pad(params["ff2_b"], (0, HIDDEN_PAD - HIDDEN)) \
        .reshape(1, HIDDEN_PAD).astype(jnp.float32)

    out_pad = _round_up(out_dims, 128)
    prep["ff3_w"] = jnp.pad(params["ff3_w"],
                            ((0, HIDDEN_PAD - HIDDEN),
                             (0, out_pad - out_dims))).astype(jnp.bfloat16)
    prep["ff3_b"] = jnp.pad(params["ff3_b"], (0, out_pad - out_dims)) \
        .reshape(1, out_pad).astype(jnp.float32)
    return prep


# ---------------------------------------------------------------------------
# Forward
# ---------------------------------------------------------------------------
@functools.partial(jax.jit, static_argnames=("out_dims",))
def image_only_net_forward(img_nchw, prep, out_dims):
    # layout: input NCHW (PyTorch) -> NHWC for the conv kernels; bf16 compute.
    x = jnp.transpose(img_nchw, (0, 2, 3, 1)).astype(jnp.bfloat16)

    for i in (1, 2, 3):
        x = conv_bn_lrelu(x, prep[f"conv{i}_w"], prep[f"conv{i}_b"])

    # NHWC(-padded) flatten; the NCHW permutation implied by torch.flatten is
    # already folded into ff1_w's rows, so no transpose is needed here.
    N = x.shape[0]
    flat = x.reshape(N, -1)

    out = mlp_head(flat,
                   prep["ff1_w"], prep["ff1_b"],
                   prep["ff2_w"], prep["ff2_b"],
                   prep["ff3_w"], prep["ff3_b"])
    return out[:, :out_dims]


if __name__ == "__main__":
    key = jax.random.PRNGKey(0)
    k_params, k_img = jax.random.split(key)

    IMAGE_H = IMAGE_W = 30   # -> 14 -> 6 -> 2 spatial; lin_in = 2*2*32 = 128
    BATCH = 2
    OUT_DIMS = 10

    params = init_params(k_params, IMAGE_H, IMAGE_W, OUT_DIMS)
    prep = prepare_params(params, IMAGE_H, IMAGE_W, OUT_DIMS)
    img = jax.random.normal(k_img, (BATCH, 3, IMAGE_H, IMAGE_W), jnp.float32)

    out = image_only_net_forward(img, prep, OUT_DIMS)
    out = jax.block_until_ready(out)
    assert out.shape == (BATCH, OUT_DIMS), out.shape
    assert jnp.all(jnp.isfinite(out))
    print("KERNEL_OK")
</pallas_src>

<mosaic_0001>
module attributes {stable_mosaic.version = 11 : i64} {
  func.func @conv_gemm_kernel(%arg0: i32, %arg1: memref<392x48xbf16, #tpu.memory_space<vmem>>, %arg2: memref<48x128xbf16, #tpu.memory_space<vmem>>, %arg3: memref<1x128xf32, #tpu.memory_space<vmem>>, %arg4: memref<392x128xbf16, #tpu.memory_space<vmem>>) attributes {dimension_semantics = [#tpu.dimension_semantics<parallel>], iteration_bounds = array<i64: 1>, scalar_prefetch = 0 : i64, scratch_operands = 0 : i64, tpu.core_type = #tpu.core_type<tc>, window_params = [{transform_indices = @transform_0, window_bounds = array<i64: 392, 48>}, {pipeline_mode = #tpu.pipeline_mode<synchronous>, transform_indices = @transform_1, window_bounds = array<i64: 48, 128>}, {pipeline_mode = #tpu.pipeline_mode<synchronous>, transform_indices = @transform_2, window_bounds = array<i64: 1, 128>}, {transform_indices = @transform_3, window_bounds = array<i64: 392, 128>}]} {
    %c0 = arith.constant 0 : index
    %c0_0 = arith.constant 0 : index
    %0 = vector.load %arg1[%c0, %c0_0] : memref<392x48xbf16, #tpu.memory_space<vmem>>, vector<392x48xbf16>
    %c0_1 = arith.constant 0 : index
    %c0_2 = arith.constant 0 : index
    %1 = vector.load %arg2[%c0_1, %c0_2] : memref<48x128xbf16, #tpu.memory_space<vmem>>, vector<48x128xbf16>
    %cst = arith.constant dense<0.000000e+00> : vector<392x128xf32>
    %2 = tpu.matmul %0, %1, %cst {dimension_numbers = #tpu.dot_dimension_numbers<[1], [0], [0], [1], [0, 0, 1, 1], [], []>} : vector<392x48xbf16>, vector<48x128xbf16>, vector<392x128xf32> -> vector<392x128xf32>
    %c0_3 = arith.constant 0 : index
    %c0_4 = arith.constant 0 : index
    %3 = vector.load %arg3[%c0_3, %c0_4] : memref<1x128xf32, #tpu.memory_space<vmem>>, vector<1x128xf32>
    %4 = vector.broadcast %3 : vector<1x128xf32> to vector<392x128xf32>
    %5 = arith.addf %2, %4 : vector<392x128xf32>
    %cst_5 = arith.constant 0.000000e+00 : f32
    %6 = vector.broadcast %cst_5 : f32 to vector<392x128xf32>
    %7 = arith.cmpf ogt, %5, %6 : vector<392x128xf32>
    %cst_6 = arith.constant 0.00999999977 : f32
    %8 = vector.broadcast %cst_6 : f32 to vector<392x128xf32>
    %9 = arith.mulf %8, %5 : vector<392x128xf32>
    %10 = arith.select %7, %5, %9 : vector<392x128xi1>, vector<392x128xf32>
    %11 = arith.truncf %10 : vector<392x128xf32> to vector<392x128xbf16>
    %c0_7 = arith.constant 0 : index
    %c0_8 = arith.constant 0 : index
    %12 = vector.load %arg4[%c0_7, %c0_8] : memref<392x128xbf16, #tpu.memory_space<vmem>>, vector<392x128xbf16>
    tpu.vector_store %arg4[%c0_7, %c0_8], %11 {strides = array<i32>} : memref<392x128xbf16, #tpu.memory_space<vmem>>, vector<392x128xbf16>,
    return
  }
  func.func @transform_0(%arg0: i32) -> (i32, i32) {
    %c0_i32 = arith.constant 0 : i32
    %c0_i32_0 = arith.constant 0 : i32
    return %arg0, %c0_i32 : i32, i32
  }
  func.func @transform_1(%arg0: i32) -> (i32, i32) {
    %c0_i32 = arith.constant 0 : i32
    %c0_i32_0 = arith.constant 0 : i32
    %c0_i32_1 = arith.constant 0 : i32
    return %c0_i32, %c0_i32_0 : i32, i32
  }
  func.func @transform_2(%arg0: i32) -> (i32, i32) {
    %c0_i32 = arith.constant 0 : i32
    %c0_i32_0 = arith.constant 0 : i32
    %c0_i32_1 = arith.constant 0 : i32
    return %c0_i32, %c0_i32_0 : i32, i32
  }
  func.func @transform_3(%arg0: i32) -> (i32, i32) {
    %c0_i32 = arith.constant 0 : i32
    %c0_i32_0 = arith.constant 0 : i32
    return %arg0, %c0_i32 : i32, i32
  }
}

module attributes {stable_mosaic.version = 11 : i64} {
  func.func @conv_gemm_kernel(%arg0: i32, %arg1: memref<72x512xbf16, #tpu.memory_space<vmem>>, %arg2: memref<512x128xbf16, #tpu.memory_space<vmem>>, %arg3: memref<1x128xf32, #tpu.memory_space<vmem>>, %arg4: memref<72x128xbf16, #tpu.memory_space<vmem>>) attributes {dimension_semantics = [#tpu.dimension_semantics<parallel>], iteration_bounds = array<i64: 1>, scalar_prefetch = 0 : i64, scratch_operands = 0 : i64, tpu.core_type = #tpu.core_type<tc>, window_params = [{transform_indices = @transform_0, window_bounds = array<i64: 72, 512>}, {pipeline_mode = #tpu.pipeline_mode<synchronous>, transform_indices = @transform_1, window_bounds = array<i64: 512, 128>}, {pipeline_mode = #tpu.pipeline_mode<synchronous>, transform_indices = @transform_2, window_bounds = array<i64: 1, 128>}, {transform_indices = @transform_3, window_bounds = array<i64: 72, 128>}]} {
    %c0 = arith.constant 0 : index
    %c0_0 = arith.constant 0 : index
    %0 = vector.load %arg1[%c0, %c0_0] : memref<72x512xbf16, #tpu.memory_space<vmem>>, vector<72x512xbf16>
    %c0_1 = arith.constant 0 : index
    %c0_2 = arith.constant 0 : index
    %1 = vector.load %arg2[%c0_1, %c0_2] : memref<512x128xbf16, #tpu.memory_space<vmem>>, vector<512x128xbf16>
    %cst = arith.constant dense<0.000000e+00> : vector<72x128xf32>
    %2 = tpu.matmul %0, %1, %cst {dimension_numbers = #tpu.dot_dimension_numbers<[1], [0], [0], [1], [0, 0, 1, 1], [], []>} : vector<72x512xbf16>, vector<512x128xbf16>, vector<72x128xf32> -> vector<72x128xf32>
    %c0_3 = arith.constant 0 : index
    %c0_4 = arith.constant 0 : index
    %3 = vector.load %arg3[%c0_3, %c0_4] : memref<1x128xf32, #tpu.memory_space<vmem>>, vector<1x128xf32>
    %4 = vector.broadcast %3 : vector<1x128xf32> to vector<72x128xf32>
    %5 = arith.addf %2, %4 : vector<72x128xf32>
    %cst_5 = arith.constant 0.000000e+00 : f32
    %6 = vector.broadcast %cst_5 : f32 to vector<72x128xf32>
    %7 = arith.cmpf ogt, %5, %6 : vector<72x128xf32>
    %cst_6 = arith.constant 0.00999999977 : f32
    %8 = vector.broadcast %cst_6 : f32 to vector<72x128xf32>
    %9 = arith.mulf %8, %5 : vector<72x128xf32>
    %10 = arith.select %7, %5, %9 : vector<72x128xi1>, vector<72x128xf32>
    %11 = arith.truncf %10 : vector<72x128xf32> to vector<72x128xbf16>
    %c0_7 = arith.constant 0 : index
    %c0_8 = arith.constant 0 : index
    %12 = vector.load %arg4[%c0_7, %c0_8] : memref<72x128xbf16, #tpu.memory_space<vmem>>, vector<72x128xbf16>
    tpu.vector_store %arg4[%c0_7, %c0_8], %11 {strides = array<i32>} : memref<72x128xbf16, #tpu.memory_space<vmem>>, vector<72x128xbf16>,
    return
  }
  func.func @transform_0(%arg0: i32) -> (i32, i32) {
    %c0_i32 = arith.constant 0 : i32
    %c0_i32_0 = arith.constant 0 : i32
    return %arg0, %c0_i32 : i32, i32
  }
  func.func @transform_1(%arg0: i32) -> (i32, i32) {
    %c0_i32 = arith.constant 0 : i32
    %c0_i32_0 = arith.constant 0 : i32
    %c0_i32_1 = arith.constant 0 : i32
    return %c0_i32, %c0_i32_0 : i32, i32
  }
  func.func @transform_2(%arg0: i32) -> (i32, i32) {
    %c0_i32 = arith.constant 0 : i32
    %c0_i32_0 = arith.constant 0 : i32
    %c0_i32_1 = arith.constant 0 : i32
    return %c0_i32, %c0_i32_0 : i32, i32
  }
  func.func @transform_3(%arg0: i32) -> (i32, i32) {
    %c0_i32 = arith.constant 0 : i32
    %c0_i32_0 = arith.constant 0 : i32
    return %arg0, %c0_i32 : i32, i32
  }
}

module attributes {stable_mosaic.version = 11 : i64} {
  func.func @conv_gemm_kernel(%arg0: i32, %arg1: memref<8x512xbf16, #tpu.memory_space<vmem>>, %arg2: memref<512x128xbf16, #tpu.memory_space<vmem>>, %arg3: memref<1x128xf32, #tpu.memory_space<vmem>>, %arg4: memref<8x128xbf16, #tpu.memory_space<vmem>>) attributes {dimension_semantics = [#tpu.dimension_semantics<parallel>], iteration_bounds = array<i64: 1>, scalar_prefetch = 0 : i64, scratch_operands = 0 : i64, tpu.core_type = #tpu.core_type<tc>, window_params = [{transform_indices = @transform_0, window_bounds = array<i64: 8, 512>}, {pipeline_mode = #tpu.pipeline_mode<synchronous>, transform_indices = @transform_1, window_bounds = array<i64: 512, 128>}, {pipeline_mode = #tpu.pipeline_mode<synchronous>, transform_indices = @transform_2, window_bounds = array<i64: 1, 128>}, {transform_indices = @transform_3, window_bounds = array<i64: 8, 128>}]} {
    %c0 = arith.constant 0 : index
    %c0_0 = arith.constant 0 : index
    %0 = vector.load %arg1[%c0, %c0_0] : memref<8x512xbf16, #tpu.memory_space<vmem>>, vector<8x512xbf16>
    %c0_1 = arith.constant 0 : index
    %c0_2 = arith.constant 0 : index
    %1 = vector.load %arg2[%c0_1, %c0_2] : memref<512x128xbf16, #tpu.memory_space<vmem>>, vector<512x128xbf16>
    %cst = arith.constant dense<0.000000e+00> : vector<8x128xf32>
    %2 = tpu.matmul %0, %1, %cst {dimension_numbers = #tpu.dot_dimension_numbers<[1], [0], [0], [1], [0, 0, 1, 1], [], []>} : vector<8x512xbf16>, vector<512x128xbf16>, vector<8x128xf32> -> vector<8x128xf32>
    %c0_3 = arith.constant 0 : index
    %c0_4 = arith.constant 0 : index
    %3 = vector.load %arg3[%c0_3, %c0_4] : memref<1x128xf32, #tpu.memory_space<vmem>>, vector<1x128xf32>
    %4 = vector.broadcast %3 : vector<1x128xf32> to vector<8x128xf32>
    %5 = arith.addf %2, %4 : vector<8x128xf32>
    %cst_5 = arith.constant 0.000000e+00 : f32
    %6 = vector.broadcast %cst_5 : f32 to vector<8x128xf32>
    %7 = arith.cmpf ogt, %5, %6 : vector<8x128xf32>
    %cst_6 = arith.constant 0.00999999977 : f32
    %8 = vector.broadcast %cst_6 : f32 to vector<8x128xf32>
    %9 = arith.mulf %8, %5 : vector<8x128xf32>
    %10 = arith.select %7, %5, %9 : vector<8x128xi1>, vector<8x128xf32>
    %11 = arith.truncf %10 : vector<8x128xf32> to vector<8x128xbf16>
    %c0_7 = arith.constant 0 : index
    %c0_8 = arith.constant 0 : index
    %12 = vector.load %arg4[%c0_7, %c0_8] : memref<8x128xbf16, #tpu.memory_space<vmem>>, vector<8x128xbf16>
    tpu.vector_store %arg4[%c0_7, %c0_8], %11 {strides = array<i32>} : memref<8x128xbf16, #tpu.memory_space<vmem>>, vector<8x128xbf16>,
    return
  }
  func.func @transform_0(%arg0: i32) -> (i32, i32) {
    %c0_i32 = arith.constant 0 : i32
    %c0_i32_0 = arith.constant 0 : i32
    return %arg0, %c0_i32 : i32, i32
  }
  func.func @transform_1(%arg0: i32) -> (i32, i32) {
    %c0_i32 = arith.constant 0 : i32
    %c0_i32_0 = arith.constant 0 : i32
    %c0_i32_1 = arith.constant 0 : i32
    return %c0_i32, %c0_i32_0 : i32, i32
  }
  func.func @transform_2(%arg0: i32) -> (i32, i32) {
    %c0_i32 = arith.constant 0 : i32
    %c0_i32_0 = arith.constant 0 : i32
    %c0_i32_1 = arith.constant 0 : i32
    return %c0_i32, %c0_i32_0 : i32, i32
  }
  func.func @transform_3(%arg0: i32) -> (i32, i32) {
    %c0_i32 = arith.constant 0 : i32
    %c0_i32_0 = arith.constant 0 : i32
    return %arg0, %c0_i32 : i32, i32
  }
}

module attributes {stable_mosaic.version = 11 : i64} {
  func.func @mlp_kernel(%arg0: i32, %arg1: memref<8x512xbf16, #tpu.memory_space<vmem>>, %arg2: memref<512x128xbf16, #tpu.memory_space<vmem>>, %arg3: memref<1x128xf32, #tpu.memory_space<vmem>>, %arg4: memref<128x128xbf16, #tpu.memory_space<vmem>>, %arg5: memref<1x128xf32, #tpu.memory_space<vmem>>, %arg6: memref<128x128xbf16, #tpu.memory_space<vmem>>, %arg7: memref<1x128xf32, #tpu.memory_space<vmem>>, %arg8: memref<8x128xf32, #tpu.memory_space<vmem>>) attributes {dimension_semantics = [#tpu.dimension_semantics<parallel>], iteration_bounds = array<i64: 1>, scalar_prefetch = 0 : i64, scratch_operands = 0 : i64, tpu.core_type = #tpu.core_type<tc>, window_params = [{transform_indices = @transform_0, window_bounds = array<i64: 8, 512>}, {pipeline_mode = #tpu.pipeline_mode<synchronous>, transform_indices = @transform_1, window_bounds = array<i64: 512, 128>}, {pipeline_mode = #tpu.pipeline_mode<synchronous>, transform_indices = @transform_2, window_bounds = array<i64: 1, 128>}, {pipeline_mode = #tpu.pipeline_mode<synchronous>, transform_indices = @transform_3, window_bounds = array<i64: 128, 128>}, {pipeline_mode = #tpu.pipeline_mode<synchronous>, transform_indices = @transform_4, window_bounds = array<i64: 1, 128>}, {pipeline_mode = #tpu.pipeline_mode<synchronous>, transform_indices = @transform_5, window_bounds = array<i64: 128, 128>}, {pipeline_mode = #tpu.pipeline_mode<synchronous>, transform_indices = @transform_6, window_bounds = array<i64: 1, 128>}, {transform_indices = @transform_7, window_bounds = array<i64: 8, 128>}]} {
    %c0 = arith.constant 0 : index
    %c0_0 = arith.constant 0 : index
    %0 = vector.load %arg1[%c0, %c0_0] : memref<8x512xbf16, #tpu.memory_space<vmem>>, vector<8x512xbf16>
    %c0_1 = arith.constant 0 : index
    %c0_2 = arith.constant 0 : index
    %1 = vector.load %arg2[%c0_1, %c0_2] : memref<512x128xbf16, #tpu.memory_space<vmem>>, vector<512x128xbf16>
    %cst = arith.constant dense<0.000000e+00> : vector<8x128xf32>
    %2 = tpu.matmul %0, %1, %cst {dimension_numbers = #tpu.dot_dimension_numbers<[1], [0], [0], [1], [0, 0, 1, 1], [], []>} : vector<8x512xbf16>, vector<512x128xbf16>, vector<8x128xf32> -> vector<8x128xf32>
    %c0_3 = arith.constant 0 : index
    %c0_4 = arith.constant 0 : index
    %3 = vector.load %arg3[%c0_3, %c0_4] : memref<1x128xf32, #tpu.memory_space<vmem>>, vector<1x128xf32>
    %4 = vector.broadcast %3 : vector<1x128xf32> to vector<8x128xf32>
    %5 = arith.addf %2, %4 : vector<8x128xf32>
    %cst_5 = arith.constant 0.000000e+00 : f32
    %6 = vector.broadcast %cst_5 : f32 to vector<8x128xf32>
    %7 = arith.maximumf %5, %6 : vector<8x128xf32>
    %8 = arith.truncf %7 : vector<8x128xf32> to vector<8x128xbf16>
    %c0_6 = arith.constant 0 : index
    %c0_7 = arith.constant 0 : index
    %9 = vector.load %arg4[%c0_6, %c0_7] : memref<128x128xbf16, #tpu.memory_space<vmem>>, vector<128x128xbf16>
    %cst_8 = arith.constant dense<0.000000e+00> : vector<8x128xf32>
    %10 = tpu.matmul %8, %9, %cst_8 {dimension_numbers = #tpu.dot_dimension_numbers<[1], [0], [0], [1], [0, 0, 1, 1], [], []>} : vector<8x128xbf16>, vector<128x128xbf16>, vector<8x128xf32> -> vector<8x128xf32>
    %c0_9 = arith.constant 0 : index
    %c0_10 = arith.constant 0 : index
    %11 = vector.load %arg5[%c0_9, %c0_10] : memref<1x128xf32, #tpu.memory_space<vmem>>, vector<1x128xf32>
    %12 = vector.broadcast %11 : vector<1x128xf32> to vector<8x128xf32>
    %13 = arith.addf %10, %12 : vector<8x128xf32>
    %cst_11 = arith.constant 0.000000e+00 : f32
    %14 = vector.broadcast %cst_11 : f32 to vector<8x128xf32>
    %15 = arith.maximumf %13, %14 : vector<8x128xf32>
    %16 = arith.truncf %15 : vector<8x128xf32> to vector<8x128xbf16>
    %c0_12 = arith.constant 0 : index
    %c0_13 = arith.constant 0 : index
    %17 = vector.load %arg6[%c0_12, %c0_13] : memref<128x128xbf16, #tpu.memory_space<vmem>>, vector<128x128xbf16>
    %cst_14 = arith.constant dense<0.000000e+00> : vector<8x128xf32>
    %18 = tpu.matmul %16, %17, %cst_14 {dimension_numbers = #tpu.dot_dimension_numbers<[1], [0], [0], [1], [0, 0, 1, 1], [], []>} : vector<8x128xbf16>, vector<128x128xbf16>, vector<8x128xf32> -> vector<8x128xf32>
    %c0_15 = arith.constant 0 : index
    %c0_16 = arith.constant 0 : index
    %19 = vector.load %arg7[%c0_15, %c0_16] : memref<1x128xf32, #tpu.memory_space<vmem>>, vector<1x128xf32>
    %20 = vector.broadcast %19 : vector<1x128xf32> to vector<8x128xf32>
    %21 = arith.addf %18, %20 : vector<8x128xf32>
    %c0_17 = arith.constant 0 : index
    %c0_18 = arith.constant 0 : index
    %22 = vector.load %arg8[%c0_17, %c0_18] : memref<8x128xf32, #tpu.memory_space<vmem>>, vector<8x128xf32>
    tpu.vector_store %arg8[%c0_17, %c0_18], %21 {strides = array<i32>} : memref<8x128xf32, #tpu.memory_space<vmem>>, vector<8x128xf32>,
    return
  }
  func.func @transform_0(%arg0: i32) -> (i32, i32) {
    %c0_i32 = arith.constant 0 : i32
    %c0_i32_0 = arith.constant 0 : i32
    return %arg0, %c0_i32 : i32, i32
  }
  func.func @transform_1(%arg0: i32) -> (i32, i32) {
    %c0_i32 = arith.constant 0 : i32
    %c0_i32_0 = arith.constant 0 : i32
    %c0_i32_1 = arith.constant 0 : i32
    return %c0_i32, %c0_i32_0 : i32, i32
  }
  func.func @transform_2(%arg0: i32) -> (i32, i32) {
    %c0_i32 = arith.constant 0 : i32
    %c0_i32_0 = arith.constant 0 : i32
    %c0_i32_1 = arith.constant 0 : i32
    return %c0_i32, %c0_i32_0 : i32, i32
  }
  func.func @transform_3(%arg0: i32) -> (i32, i32) {
    %c0_i32 = arith.constant 0 : i32
    %c0_i32_0 = arith.constant 0 : i32
    %c0_i32_1 = arith.constant 0 : i32
    return %c0_i32, %c0_i32_0 : i32, i32
  }
  func.func @transform_4(%arg0: i32) -> (i32, i32) {
    %c0_i32 = arith.constant 0 : i32
    %c0_i32_0 = arith.constant 0 : i32
    %c0_i32_1 = arith.constant 0 : i32
    return %c0_i32, %c0_i32_0 : i32, i32
  }
  func.func @transform_5(%arg0: i32) -> (i32, i32) {
    %c0_i32 = arith.constant 0 : i32
    %c0_i32_0 = arith.constant 0 : i32
    %c0_i32_1 = arith.constant 0 : i32
    return %c0_i32, %c0_i32_0 : i32, i32
  }
  func.func @transform_6(%arg0: i32) -> (i32, i32) {
    %c0_i32 = arith.constant 0 : i32
    %c0_i32_0 = arith.constant 0 : i32
    %c0_i32_1 = arith.constant 0 : i32
    return %c0_i32, %c0_i32_0 : i32, i32
  }
  func.func @transform_7(%arg0: i32) -> (i32, i32) {
    %c0_i32 = arith.constant 0 : i32
    %c0_i32_0 = arith.constant 0 : i32
    return %arg0, %c0_i32 : i32, i32
  }
}

</mosaic_0001>

<bundles_post_ra>
// kernel: image_only_net_forward.4
= control target key start
LH: loop header
LB: loop body
LE: loop exit
PB: predicated region body
PF: predicated region fallthrough
CT: control target
= control target key end

     0   :  { %vm215_vm0 = vcmask 392192   ;;  %s1244_s1 = inlined_call_operand.vmem [shape: bf16[48,128], index: 1, kind: input, shape index: {}]   ;;  %s1245_s2 = inlined_call_operand.vmem [shape: f32[1,128], index: 2, kind: input, shape index: {}]   ;;  %s1246_s0 = inlined_call_operand.vmem [shape: bf16[392,48], index: 0, kind: input, shape index: {}]   ;;  %s1247_s3 = inlined_call_operand.vmem [shape: bf16[392,128], index: 3, kind: output, shape index: {}]  }
   0x1   :  { %v832_v0 = vld [vmem:[%s1244_s1 + $0x10] sm:$0xff]  ;;  %v831_v1 = vld [vmem:[%s1244_s1 + $0x8] sm:$0xff]  ;;  %v830_v2 = vld [vmem:[%s1244_s1] sm:$0xff] }
   0x2   :  { %976 = vmatpush.bf16.msra.mxu1 %v832_v0  ;;  %977 = vmatpush.bf16.msra.mxu2 %v832_v0  ;;  %v812_v3 = vld [vmem:[%s1246_s0 + $0x30] sm:$0xff]  ;;  %v819_v4 = vld [vmem:[%s1246_s0 + $0x68] sm:$0xff]  ;;  %v806_v5 = vld [vmem:[%s1246_s0] sm:$0xff] }
   0x3   :  { %296 = vmatpush.bf16.msra.mxu0 %v832_v0  ;;  %978 = vmatpush.bf16.msra.mxu3 %v832_v0  ;;  %v826_v6 = vld [vmem:[%s1246_s0 + $0xa0] sm:$0xff]  ;;  %v813_v7 = vld [vmem:[%s1246_s0 + $0x38] sm:$0xff]  ;;  %v820_v8 = vld [vmem:[%s1246_s0 + $0x70] sm:$0xff] }
   0x4   :  { %v807_v9 = vld [vmem:[%s1246_s0 + $0x8] sm:$0xff]  ;;  %v814_v11 = vld [vmem:[%s1246_s0 + $0x40] sm:$0xff]  ;;  %v821_v12 = vld [vmem:[%s1246_s0 + $0x78] sm:$0xff] }
   0x5   :  { %v827_v10 = vld [vmem:[%s1246_s0 + $0xa8] sm:$0xff]  ;;  %v808_v13 = vld [vmem:[%s1246_s0 + $0x10] sm:$0xff]  ;;  %v822_v16 = vld [vmem:[%s1246_s0 + $0x80] sm:$0xff] }
   0x6   :  { %979 = vmatpush.bf16.msra.mxu1 %v831_v1  ;;  %980 = vmatpush.bf16.msra.mxu2 %v831_v1  ;;  %v828_v14 = vld [vmem:[%s1246_s0 + $0xb0] sm:$0xff]  ;;  %v815_v15 = vld [vmem:[%s1246_s0 + $0x48] sm:$0xff]  ;;  %v809_v17 = vld [vmem:[%s1246_s0 + $0x18] sm:$0xff] }
   0x7   :  { %297 = vmatpush.bf16.msra.mxu0 %v831_v1  ;;  %981 = vmatpush.bf16.msra.mxu3 %v831_v1  ;;  %v829_v18 = vld [vmem:[%s1246_s0 + $0xb8] sm:$0xff]  ;;  %v63_v19 = vld [vmem:[%s1246_s0 + $0xc0] sm:$0xf]  ;;  %v816_v20 = vld [vmem:[%s1246_s0 + $0x50] sm:$0xff] }
   0x8   :  { %v823_v21 = vld [vmem:[%s1246_s0 + $0x88] sm:$0xff]  ;;  %v171_v22 = vunpack.c.l.b16 %v63_v19  ;;  %v810_v23 = vld [vmem:[%s1246_s0 + $0x20] sm:$0xff]  ;;  %v817_v25 = vld [vmem:[%s1246_s0 + $0x58] sm:$0xff] }
   0x9   :  { %v824_v26 = vld [vmem:[%s1246_s0 + $0x90] sm:$0xff]  ;;  %v811_v27 = vld [vmem:[%s1246_s0 + $0x28] sm:$0xff]  ;;  %v818_v28 = vld [vmem:[%s1246_s0 + $0x60] sm:$0xff] }
   0xa   :  { %982 = vmatpush.bf16.msra.mxu1 %v830_v2  ;;  %983 = vmatpush.bf16.msra.mxu2 %v830_v2  ;;  %v196_v24 = vpack.c.b16 %v171_v22, %v171_v22  ;;  %v825_v29 = vld [vmem:[%s1246_s0 + $0x98] sm:$0xff]  ;;  %v1118_v31 = vld [vmem:[%s1245_s2] ss:$0 sm:$0xff] }
   0xb   :  { %298 = vmatpush.bf16.msra.mxu0 %v830_v2  ;;  %984 = vmatpush.bf16.msra.mxu3 %v830_v2 }
   0xd   :  { %787 = vmatmul.msk.bf16.vlgmr.msra.gmra.mxu1 %vm215_vm0, %v812_v3  ;;  %794 = vmatmul.msk.bf16.vlgmr.msra.gmra.mxu2 %vm215_vm0, %v819_v4 }
   0xe   :  { %781 = vmatmul.msk.bf16.vlgmr.msra.gmra.mxu0 %vm215_vm0, %v806_v5  ;;  %801 = vmatmul.msk.bf16.vlgmr.msra.gmra.mxu3 %vm215_vm0, %v826_v6 }
  0x1d   :  { %788 = vmatmul.msk.bf16.gmra.mxu1 %vm215_vm0, %v813_v7  ;;  %795 = vmatmul.msk.bf16.gmra.mxu2 %vm215_vm0, %v820_v8 }
  0x1e   :  { %782 = vmatmul.msk.bf16.gmra.mxu0 %vm215_vm0, %v807_v9  ;;  %802 = vmatmul.msk.bf16.gmra.mxu3 %vm215_vm0, %v827_v10 }
  0x2d   :  { %789 = vmatmul.msk.bf16.gmra.mxu1 %vm215_vm0, %v814_v11  ;;  %796 = vmatmul.msk.bf16.gmra.mxu2 %vm215_vm0, %v821_v12 }
  0x2e   :  { %783 = vmatmul.msk.bf16.gmra.mxu0 %vm215_vm0, %v808_v13  ;;  %803 = vmatmul.msk.bf16.gmra.mxu3 %vm215_vm0, %v828_v14 }
  0x3d   :  { %790 = vmatmul.msk.bf16.gmra.mxu1 %vm215_vm0, %v815_v15  ;;  %797 = vmatmul.msk.bf16.gmra.mxu2 %vm215_vm0, %v822_v16 }
  0x3e   :  { %784 = vmatmul.msk.bf16.gmra.mxu0 %vm215_vm0, %v809_v17  ;;  %804 = vmatmul.msk.bf16.gmra.mxu3 %vm215_vm0, %v829_v18 }
  0x4d   :  { %791 = vmatmul.msk.bf16.gmra.mxu1 %vm215_vm0, %v816_v20  ;;  %798 = vmatmul.msk.bf16.gmra.mxu2 %vm215_vm0, %v823_v21 }
  0x4e   :  { %785 = vmatmul.msk.bf16.gmra.mxu0 %vm215_vm0, %v810_v23  ;;  %805 = vmatmul.msk.bf16.gmra.mxu3 %vm215_vm0, %v196_v24 }
  0x5d   :  { %792 = vmatmul.msk.bf16.gmra.mxu1 %vm215_vm0, %v817_v25  ;;  %799 = vmatmul.msk.bf16.gmra.mxu2 %vm215_vm0, %v824_v26 }
  0x5e   :  { %786 = vmatmul.msk.bf16.gmra.mxu0 %vm215_vm0, %v811_v27 }
  0x6d   :  { %793 = vmatmul.msk.bf16.gmra.mxu1 %vm215_vm0, %v818_v28  ;;  %800 = vmatmul.msk.bf16.gmra.mxu2 %vm215_vm0, %v825_v29 }
  0x8a   :  { %v330_v30 = vpop.f32.mrf.mxu1 }
  0x8b   :  { %v300_v32 = vpop.f32.mrf.mxu0  ;;  %v331_v34 = vadd.f32 %v1118_v31, %v330_v30 }
  0x8c   :  { %v301_v33 = vadd.f32 %v1118_v31, %v300_v32 }
  0x8d   :  { %v485_v39 = vmul.f32 0.01, %v331_v34  ;;  %vm436_vm2 = vcmp.gt.f32.partialorder %v331_v34, 0.0 }
  0x8e   :  { %v473_v38 = vmul.f32 0.01, %v301_v33  ;;  %vm424_vm1 = vcmp.gt.f32.partialorder %v301_v33, 0.0 }
  0x8f   :  { %v534_v48 = vsel %vm436_vm2, %v331_v34, %v485_v39 }
  0x90   :  { %v365_v35 = vpop.f32.mrf.mxu2  ;;  %v522_v46 = vsel %vm424_vm1, %v301_v33, %v473_v38 }
  0x91   :  { %v400_v36 = vpop.f32.mrf.mxu3  ;;  %v366_v44 = vadd.f32 %v1118_v31, %v365_v35 }
  0x92   :  { %v332_v37 = vpop.f32.mrf.mxu1  ;;  %v401_v43 = vadd.f32 %v1118_v31, %v400_v36 }
  0x93   :  { %v333_v40 = vadd.f32 %v1118_v31, %v332_v37  ;;  %v302_v41 = vpop.f32.mrf.mxu0  ;;  %v499_v54 = vmul.f32 0.01, %v366_v44  ;;  %vm450_vm6 = vcmp.gt.f32.partialorder %v366_v44, 0.0 }
  0x94   :  { %v303_v42 = vadd.f32 %v1118_v31, %v302_v41  ;;  %v513_v53 = vmul.f32 0.01, %v401_v43  ;;  %vm464_vm5 = vcmp.gt.f32.partialorder %v401_v43, 0.0 }
  0x95   :  { %vm437_vm3 = vcmp.gt.f32.partialorder %v333_v40, 0.0  ;;  %v486_v45 = vmul.f32 0.01, %v333_v40  ;;  %v548_v0 = vsel %vm450_vm6, %v366_v44, %v499_v54 }
  0x96   :  { %vm425_vm4 = vcmp.gt.f32.partialorder %v303_v42, 0.0  ;;  %v474_v47 = vmul.f32 0.01, %v303_v42  ;;  %v562_v62 = vsel %vm464_vm5, %v401_v43, %v513_v53 }
  0x97   :  { %v535_v49 = vsel %vm437_vm3, %v333_v40, %v486_v45 }
  0x98   :  { %v866_v50 = vpack.c.bf16 %v535_v49, %v534_v48  ;;  %v367_v51 = vpop.f32.mrf.mxu2  ;;  %v523_v52 = vsel %vm425_vm4, %v303_v42, %v474_v47 }
  0x99   :  { %v368_v55 = vadd.f32 %v1118_v31, %v367_v51  ;;  %v836_v56 = vpack.c.bf16 %v523_v52, %v522_v46  ;;  %v402_v57 = vpop.f32.mrf.mxu3 }
  0x9a   :  { %958 = vst [vmem:[%s1247_s3 + $0x30] sm:$0xff] %v866_v50   ;;  %v335_v58 = vpop.f32.mrf.mxu1  ;;  %v403_v59 = vadd.f32 %v1118_v31, %v402_v57 }
  0x9b   :  { %vm451_vm7 = vcmp.gt.f32.partialorder %v368_v55, 0.0  ;;  %v500_v60 = vmul.f32 0.01, %v368_v55  ;;  %837 = vst [vmem:[%s1247_s3] sm:$0xff] %v836_v56   ;;  %v305_v61 = vpop.f32.mrf.mxu0  ;;  %v336_v5 = vadd.f32 %v1118_v31, %v335_v58 }
  0x9c   :  { %vm465_vm8 = vcmp.gt.f32.partialorder %v403_v59, 0.0  ;;  %v514_v63 = vmul.f32 0.01, %v403_v59  ;;  %v306_v3 = vadd.f32 %v1118_v31, %v305_v61 }
  0x9d   :  { %v549_v1 = vsel %vm451_vm7, %v368_v55, %v500_v60  ;;  %v487_v11 = vmul.f32 0.01, %v336_v5  ;;  %vm438_vm10 = vcmp.gt.f32.partialorder %v336_v5, 0.0 }
  0x9e   :  { %v901_v2 = vpack.c.bf16 %v549_v1, %v548_v0  ;;  %v563_v4 = vsel %vm465_vm8, %v403_v59, %v514_v63  ;;  %v475_v10 = vmul.f32 0.01, %v306_v3  ;;  %vm426_vm9 = vcmp.gt.f32.partialorder %v306_v3, 0.0 }
  0x9f   :  { %v936_v6 = vpack.c.bf16 %v563_v4, %v562_v62  ;;  %v536_v20 = vsel %vm438_vm10, %v336_v5, %v487_v11 }
  0xa0   :  { %965 = vst [vmem:[%s1247_s3 + $0x68] sm:$0xff] %v901_v2   ;;  %v370_v7 = vpop.f32.mrf.mxu2  ;;  %v524_v18 = vsel %vm426_vm9, %v306_v3, %v475_v10 }
  0xa1   :  { %972 = vst [vmem:[%s1247_s3 + $0xa0] sm:$0xff] %v936_v6   ;;  %v405_v8 = vpop.f32.mrf.mxu3  ;;  %v371_v16 = vadd.f32 %v1118_v31, %v370_v7 }
  0xa2   :  { %v337_v9 = vpop.f32.mrf.mxu1  ;;  %v406_v15 = vadd.f32 %v1118_v31, %v405_v8 }
  0xa3   :  { %v338_v12 = vadd.f32 %v1118_v31, %v337_v9  ;;  %v307_v13 = vpop.f32.mrf.mxu0  ;;  %v501_v26 = vmul.f32 0.01, %v371_v16  ;;  %vm452_vm14 = vcmp.gt.f32.partialorder %v371_v16, 0.0 }
  0xa4   :  { %v308_v14 = vadd.f32 %v1118_v31, %v307_v13  ;;  %v515_v25 = vmul.f32 0.01, %v406_v15  ;;  %vm466_vm13 = vcmp.gt.f32.partialorder %v406_v15, 0.0 }
  0xa5   :  { %vm439_vm11 = vcmp.gt.f32.partialorder %v338_v12, 0.0  ;;  %v488_v17 = vmul.f32 0.01, %v338_v12  ;;  %v550_v37 = vsel %vm452_vm14, %v371_v16, %v501_v26 }
  0xa6   :  { %vm427_vm12 = vcmp.gt.f32.partialorder %v308_v14, 0.0  ;;  %v476_v19 = vmul.f32 0.01, %v308_v14  ;;  %v564_v35 = vsel %vm466_vm13, %v406_v15, %v515_v25 }
  0xa7   :  { %v537_v21 = vsel %vm439_vm11, %v338_v12, %v488_v17 }
  0xa8   :  { %v871_v22 = vpack.c.bf16 %v537_v21, %v536_v20  ;;  %v372_v23 = vpop.f32.mrf.mxu2  ;;  %v525_v24 = vsel %vm427_vm12, %v308_v14, %v476_v19 }
  0xa9   :  { %v373_v27 = vadd.f32 %v1118_v31, %v372_v23  ;;  %v841_v28 = vpack.c.bf16 %v525_v24, %v524_v18  ;;  %v407_v29 = vpop.f32.mrf.mxu3 }
  0xaa   :  { %959 = vst [vmem:[%s1247_s3 + $0x38] sm:$0xff] %v871_v22   ;;  %v340_v30 = vpop.f32.mrf.mxu1  ;;  %v408_v32 = vadd.f32 %v1118_v31, %v407_v29 }
  0xab   :  { %vm453_vm15 = vcmp.gt.f32.partialorder %v373_v27, 0.0  ;;  %v502_v33 = vmul.f32 0.01, %v373_v27  ;;  %953 = vst [vmem:[%s1247_s3 + $0x8] sm:$0xff] %v841_v28   ;;  %v310_v34 = vpop.f32.mrf.mxu0  ;;  %v341_v42 = vadd.f32 %v1118_v31, %v340_v30 }
  0xac   :  { %vm467_vm0 = vcmp.gt.f32.partialorder %v408_v32, 0.0  ;;  %v516_v36 = vmul.f32 0.01, %v408_v32  ;;  %v311_v40 = vadd.f32 %v1118_v31, %v310_v34 }
  0xad   :  { %v551_v38 = vsel %vm453_vm15, %v373_v27, %v502_v33  ;;  %v489_v48 = vmul.f32 0.01, %v341_v42  ;;  %vm440_vm2 = vcmp.gt.f32.partialorder %v341_v42, 0.0 }
  0xae   :  { %v906_v39 = vpack.c.bf16 %v551_v38, %v550_v37  ;;  %v565_v41 = vsel %vm467_vm0, %v408_v32, %v516_v36  ;;  %v477_v47 = vmul.f32 0.01, %v311_v40  ;;  %vm428_vm1 = vcmp.gt.f32.partialorder %v311_v40, 0.0 }
  0xaf   :  { %v941_v43 = vpack.c.bf16 %v565_v41, %v564_v35  ;;  %v538_v57 = vsel %vm440_vm2, %v341_v42, %v489_v48 }
  0xb0   :  { %966 = vst [vmem:[%s1247_s3 + $0x70] sm:$0xff] %v906_v39   ;;  %v375_v44 = vpop.f32.mrf.mxu2  ;;  %v526_v55 = vsel %vm428_vm1, %v311_v40, %v477_v47 }
  0xb1   :  { %973 = vst [vmem:[%s1247_s3 + $0xa8] sm:$0xff] %v941_v43   ;;  %v410_v45 = vpop.f32.mrf.mxu3  ;;  %v376_v53 = vadd.f32 %v1118_v31, %v375_v44 }
  0xb2   :  { %v342_v46 = vpop.f32.mrf.mxu1  ;;  %v411_v52 = vadd.f32 %v1118_v31, %v410_v45 }
  0xb3   :  { %v343_v49 = vadd.f32 %v1118_v31, %v342_v46  ;;  %v312_v50 = vpop.f32.mrf.mxu0  ;;  %v503_v63 = vmul.f32 0.01, %v376_v53  ;;  %vm454_vm6 = vcmp.gt.f32.partialorder %v376_v53, 0.0 }
  0xb4   :  { %v313_v51 = vadd.f32 %v1118_v31, %v312_v50  ;;  %v517_v62 = vmul.f32 0.01, %v411_v52  ;;  %vm468_vm5 = vcmp.gt.f32.partialorder %v411_v52, 0.0 }
  0xb5   :  { %vm441_vm3 = vcmp.gt.f32.partialorder %v343_v49, 0.0  ;;  %v490_v54 = vmul.f32 0.01, %v343_v49  ;;  %v552_v9 = vsel %vm454_vm6, %v376_v53, %v503_v63 }
  0xb6   :  { %vm429_vm4 = vcmp.gt.f32.partialorder %v313_v51, 0.0  ;;  %v478_v56 = vmul.f32 0.01, %v313_v51  ;;  %v566_v7 = vsel %vm468_vm5, %v411_v52, %v517_v62 }
  0xb7   :  { %v539_v58 = vsel %vm441_vm3, %v343_v49, %v490_v54 }
  0xb8   :  { %v876_v59 = vpack.c.bf16 %v539_v58, %v538_v57  ;;  %v377_v60 = vpop.f32.mrf.mxu2  ;;  %v527_v61 = vsel %vm429_vm4, %v313_v51, %v478_v56 }
  0xb9   :  { %v378_v0 = vadd.f32 %v1118_v31, %v377_v60  ;;  %v846_v1 = vpack.c.bf16 %v527_v61, %v526_v55  ;;  %v412_v2 = vpop.f32.mrf.mxu3 }
  0xba   :  { %960 = vst [vmem:[%s1247_s3 + $0x40] sm:$0xff] %v876_v59   ;;  %v345_v3 = vpop.f32.mrf.mxu1  ;;  %v413_v4 = vadd.f32 %v1118_v31, %v412_v2 }
  0xbb   :  { %vm455_vm7 = vcmp.gt.f32.partialorder %v378_v0, 0.0  ;;  %v504_v5 = vmul.f32 0.01, %v378_v0  ;;  %954 = vst [vmem:[%s1247_s3 + $0x10] sm:$0xff] %v846_v1   ;;  %v315_v6 = vpop.f32.mrf.mxu0  ;;  %v346_v14 = vadd.f32 %v1118_v31, %v345_v3 }
  0xbc   :  { %vm469_vm8 = vcmp.gt.f32.partialorder %v413_v4, 0.0  ;;  %v518_v8 = vmul.f32 0.01, %v413_v4  ;;  %v316_v12 = vadd.f32 %v1118_v31, %v315_v6 }
  0xbd   :  { %v553_v10 = vsel %vm455_vm7, %v378_v0, %v504_v5  ;;  %v491_v20 = vmul.f32 0.01, %v346_v14  ;;  %vm442_vm10 = vcmp.gt.f32.partialorder %v346_v14, 0.0 }
  0xbe   :  { %v911_v11 = vpack.c.bf16 %v553_v10, %v552_v9  ;;  %v567_v13 = vsel %vm469_vm8, %v413_v4, %v518_v8  ;;  %v479_v19 = vmul.f32 0.01, %v316_v12  ;;  %vm430_vm9 = vcmp.gt.f32.partialorder %v316_v12, 0.0 }
  0xbf   :  { %v946_v15 = vpack.c.bf16 %v567_v13, %v566_v7  ;;  %v540_v29 = vsel %vm442_vm10, %v346_v14, %v491_v20 }
  0xc0   :  { %967 = vst [vmem:[%s1247_s3 + $0x78] sm:$0xff] %v911_v11   ;;  %v380_v16 = vpop.f32.mrf.mxu2  ;;  %v528_v27 = vsel %vm430_vm9, %v316_v12, %v479_v19 }
  0xc1   :  { %974 = vst [vmem:[%s1247_s3 + $0xb0] sm:$0xff] %v946_v15   ;;  %v415_v17 = vpop.f32.mrf.mxu3  ;;  %v381_v25 = vadd.f32 %v1118_v31, %v380_v16 }
  0xc2   :  { %v347_v18 = vpop.f32.mrf.mxu1  ;;  %v416_v24 = vadd.f32 %v1118_v31, %v415_v17 }
  0xc3   :  { %v348_v21 = vadd.f32 %v1118_v31, %v347_v18  ;;  %v317_v22 = vpop.f32.mrf.mxu0  ;;  %v505_v36 = vmul.f32 0.01, %v381_v25  ;;  %vm456_vm14 = vcmp.gt.f32.partialorder %v381_v25, 0.0 }
  0xc4   :  { %v318_v23 = vadd.f32 %v1118_v31, %v317_v22  ;;  %v519_v35 = vmul.f32 0.01, %v416_v24  ;;  %vm470_vm13 = vcmp.gt.f32.partialorder %v416_v24, 0.0 }
  0xc5   :  { %vm443_vm11 = vcmp.gt.f32.partialorder %v348_v21, 0.0  ;;  %v492_v26 = vmul.f32 0.01, %v348_v21  ;;  %v554_v46 = vsel %vm456_vm14, %v381_v25, %v505_v36 }
  0xc6   :  { %vm431_vm12 = vcmp.gt.f32.partialorder %v318_v23, 0.0  ;;  %v480_v28 = vmul.f32 0.01, %v318_v23  ;;  %v568_v44 = vsel %vm470_vm13, %v416_v24, %v519_v35 }
  0xc7   :  { %v541_v30 = vsel %vm443_vm11, %v348_v21, %v492_v26 }
  0xc8   :  { %v881_v32 = vpack.c.bf16 %v541_v30, %v540_v29  ;;  %v382_v33 = vpop.f32.mrf.mxu2  ;;  %v529_v34 = vsel %vm431_vm12, %v318_v23, %v480_v28 }
  0xc9   :  { %v383_v37 = vadd.f32 %v1118_v31, %v382_v33  ;;  %v851_v38 = vpack.c.bf16 %v529_v34, %v528_v27  ;;  %v417_v39 = vpop.f32.mrf.mxu3 }
  0xca   :  { %961 = vst [vmem:[%s1247_s3 + $0x48] sm:$0xff] %v881_v32   ;;  %v350_v40 = vpop.f32.mrf.mxu1  ;;  %v418_v41 = vadd.f32 %v1118_v31, %v417_v39 }
  0xcb   :  { %vm457_vm15 = vcmp.gt.f32.partialorder %v383_v37, 0.0  ;;  %v506_v42 = vmul.f32 0.01, %v383_v37  ;;  %955 = vst [vmem:[%s1247_s3 + $0x18] sm:$0xff] %v851_v38   ;;  %v320_v43 = vpop.f32.mrf.mxu0  ;;  %v351_v51 = vadd.f32 %v1118_v31, %v350_v40 }
  0xcc   :  { %vm471_vm0 = vcmp.gt.f32.partialorder %v418_v41, 0.0  ;;  %v520_v45 = vmul.f32 0.01, %v418_v41  ;;  %v321_v49 = vadd.f32 %v1118_v31, %v320_v43 }
  0xcd   :  { %v555_v47 = vsel %vm457_vm15, %v383_v37, %v506_v42  ;;  %v493_v57 = vmul.f32 0.01, %v351_v51  ;;  %vm444_vm2 = vcmp.gt.f32.partialorder %v351_v51, 0.0 }
  0xce   :  { %v916_v48 = vpack.c.bf16 %v555_v47, %v554_v46  ;;  %v569_v50 = vsel %vm471_vm0, %v418_v41, %v520_v45  ;;  %v481_v56 = vmul.f32 0.01, %v321_v49  ;;  %vm432_vm1 = vcmp.gt.f32.partialorder %v321_v49, 0.0 }
  0xcf   :  { %v951_v52 = vpack.c.bf16 %v569_v50, %v568_v44  ;;  %v542_v2 = vsel %vm444_vm2, %v351_v51, %v493_v57 }
  0xd0   :  { %968 = vst [vmem:[%s1247_s3 + $0x80] sm:$0xff] %v916_v48   ;;  %v385_v53 = vpop.f32.mrf.mxu2  ;;  %v530_v0 = vsel %vm432_vm1, %v321_v49, %v481_v56 }
  0xd1   :  { %975 = vst [vmem:[%s1247_s3 + $0xb8] sm:$0xff] %v951_v52   ;;  %v420_v54 = vpop.f32.mrf.mxu3  ;;  %v386_v61 = vadd.f32 %v1118_v31, %v385_v53 }
  0xd2   :  { %v352_v55 = vpop.f32.mrf.mxu1  ;;  %v421_v63 = vadd.f32 %v1118_v31, %v420_v54 }
  0xd3   :  { %v353_v58 = vadd.f32 %v1118_v31, %v352_v55  ;;  %v322_v59 = vpop.f32.mrf.mxu0  ;;  %v507_v8 = vmul.f32 0.01, %v386_v61  ;;  %vm458_vm6 = vcmp.gt.f32.partialorder %v386_v61, 0.0 }
  0xd4   :  { %v323_v60 = vadd.f32 %v1118_v31, %v322_v59  ;;  %vm472_vm5 = vcmp.gt.f32.partialorder %v421_v63, 0.0  ;;  %v521_v4 = vmul.f32 0.01, %v421_v63 }
  0xd5   :  { %vm445_vm3 = vcmp.gt.f32.partialorder %v353_v58, 0.0  ;;  %v494_v62 = vmul.f32 0.01, %v353_v58  ;;  %v556_v17 = vsel %vm458_vm6, %v386_v61, %v507_v8 }
  0xd6   :  { %vm433_vm4 = vcmp.gt.f32.partialorder %v323_v60, 0.0  ;;  %v482_v1 = vmul.f32 0.01, %v323_v60  ;;  %v570_v11 = vsel %vm472_vm5, %v421_v63, %v521_v4 }
  0xd7   :  { %v543_v3 = vsel %vm445_vm3, %v353_v58, %v494_v62  ;;  %v619_v14 = vpack.c.bf16 %v570_v11, %v570_v11 }
  0xd8   :  { %v886_v5 = vpack.c.bf16 %v543_v3, %v542_v2  ;;  %v387_v6 = vpop.f32.mrf.mxu2  ;;  %v531_v7 = vsel %vm433_vm4, %v323_v60, %v482_v1 }
  0xd9   :  { %v388_v9 = vadd.f32 %v1118_v31, %v387_v6  ;;  %v856_v10 = vpack.c.bf16 %v531_v7, %v530_v0  ;;  %v422_v12 = vpop.f32.mrf.mxu3  ;;  %668 = vst [vmem:[%s1247_s3 + $0xc0] sm:$0xf] %v619_v14 }
  0xda   :  { %962 = vst [vmem:[%s1247_s3 + $0x50] sm:$0xff] %v886_v5   ;;  %v355_v13 = vpop.f32.mrf.mxu1 }
  0xdb   :  { %vm459_vm7 = vcmp.gt.f32.partialorder %v388_v9, 0.0  ;;  %v508_v15 = vmul.f32 0.01, %v388_v9  ;;  %956 = vst [vmem:[%s1247_s3 + $0x20] sm:$0xff] %v856_v10   ;;  %v325_v16 = vpop.f32.mrf.mxu0  ;;  %v356_v21 = vadd.f32 %v1118_v31, %v355_v13 }
  0xdc   :  { %v326_v20 = vadd.f32 %v1118_v31, %v325_v16 }
  0xdd   :  { %v557_v18 = vsel %vm459_vm7, %v388_v9, %v508_v15  ;;  %v495_v25 = vmul.f32 0.01, %v356_v21  ;;  %vm446_vm9 = vcmp.gt.f32.partialorder %v356_v21, 0.0 }
  0xde   :  { %v921_v19 = vpack.c.bf16 %v557_v18, %v556_v17  ;;  %v483_v24 = vmul.f32 0.01, %v326_v20  ;;  %vm434_vm8 = vcmp.gt.f32.partialorder %v326_v20, 0.0 }
  0xdf   :  { %v544_v34 = vsel %vm446_vm9, %v356_v21, %v495_v25 }
  0xe0   :  { %969 = vst [vmem:[%s1247_s3 + $0x88] sm:$0xff] %v921_v19   ;;  %v390_v22 = vpop.f32.mrf.mxu2  ;;  %v532_v32 = vsel %vm434_vm8, %v326_v20, %v483_v24 }
  0xe1   :  { %v391_v29 = vadd.f32 %v1118_v31, %v390_v22 }
  0xe2   :  { %v357_v23 = vpop.f32.mrf.mxu1 }
  0xe3   :  { %v358_v26 = vadd.f32 %v1118_v31, %v357_v23  ;;  %v327_v27 = vpop.f32.mrf.mxu0  ;;  %v509_v39 = vmul.f32 0.01, %v391_v29  ;;  %vm460_vm12 = vcmp.gt.f32.partialorder %v391_v29, 0.0 }
  0xe4   :  { %v328_v28 = vadd.f32 %v1118_v31, %v327_v27 }
  0xe5   :  { %vm447_vm10 = vcmp.gt.f32.partialorder %v358_v26, 0.0  ;;  %v496_v30 = vmul.f32 0.01, %v358_v26  ;;  %v558_v44 = vsel %vm460_vm12, %v391_v29, %v509_v39 }
  0xe6   :  { %vm435_vm11 = vcmp.gt.f32.partialorder %v328_v28, 0.0  ;;  %v484_v33 = vmul.f32 0.01, %v328_v28 }
  0xe7   :  { %v545_v35 = vsel %vm447_vm10, %v358_v26, %v496_v30 }
  0xe8   :  { %v891_v36 = vpack.c.bf16 %v545_v35, %v544_v34  ;;  %v392_v37 = vpop.f32.mrf.mxu2  ;;  %v533_v38 = vsel %vm435_vm11, %v328_v28, %v484_v33 }
  0xe9   :  { %v393_v40 = vadd.f32 %v1118_v31, %v392_v37  ;;  %v861_v41 = vpack.c.bf16 %v533_v38, %v532_v32 }
  0xea   :  { %963 = vst [vmem:[%s1247_s3 + $0x58] sm:$0xff] %v891_v36   ;;  %v360_v42 = vpop.f32.mrf.mxu1 }
  0xeb   :  { %vm461_vm13 = vcmp.gt.f32.partialorder %v393_v40, 0.0  ;;  %v510_v43 = vmul.f32 0.01, %v393_v40  ;;  %957 = vst [vmem:[%s1247_s3 + $0x28] sm:$0xff] %v861_v41   ;;  %v361_v47 = vadd.f32 %v1118_v31, %v360_v42 }
  0xed   :  { %v559_v45 = vsel %vm461_vm13, %v393_v40, %v510_v43  ;;  %v497_v50 = vmul.f32 0.01, %v361_v47  ;;  %vm448_vm14 = vcmp.gt.f32.partialorder %v361_v47, 0.0 }
  0xee   :  { %v926_v46 = vpack.c.bf16 %v559_v45, %v558_v44 }
  0xef   :  { %v546_v54 = vsel %vm448_vm14, %v361_v47, %v497_v50 }
  0xf0   :  { %970 = vst [vmem:[%s1247_s3 + $0x90] sm:$0xff] %v926_v46   ;;  %v395_v48 = vpop.f32.mrf.mxu2 }
  0xf1   :  { %v396_v52 = vadd.f32 %v1118_v31, %v395_v48 }
  0xf2   :  { %v362_v49 = vpop.f32.mrf.mxu1 }
  0xf3   :  { %v363_v51 = vadd.f32 %v1118_v31, %v362_v49  ;;  %v511_v58 = vmul.f32 0.01, %v396_v52  ;;  %vm462_vm0 = vcmp.gt.f32.partialorder %v396_v52, 0.0 }
  0xf5   :  { %vm449_vm15 = vcmp.gt.f32.partialorder %v363_v51, 0.0  ;;  %v498_v53 = vmul.f32 0.01, %v363_v51  ;;  %v560_v61 = vsel %vm462_vm0, %v396_v52, %v511_v58 }
  0xf7   :  { %v547_v55 = vsel %vm449_vm15, %v363_v51, %v498_v53 }
  0xf8   :  { %v896_v56 = vpack.c.bf16 %v547_v55, %v546_v54  ;;  %v397_v57 = vpop.f32.mrf.mxu2 }
  0xf9   :  { %v398_v59 = vadd.f32 %v1118_v31, %v397_v57 }
  0xfa   :  { %964 = vst [vmem:[%s1247_s3 + $0x60] sm:$0xff] %v896_v56  }
  0xfb   :  { %vm463_vm1 = vcmp.gt.f32.partialorder %v398_v59, 0.0  ;;  %v512_v60 = vmul.f32 0.01, %v398_v59 }
  0xfd   :  { %v561_v62 = vsel %vm463_vm1, %v398_v59, %v512_v60 }
  0xfe   :  { %v931_v63 = vpack.c.bf16 %v561_v62, %v560_v61 }
 0x100   :  { %971 = vst [vmem:[%s1247_s3 + $0x98] sm:$0xff] %v931_v63  }

// kernel: image_only_net_forward.5
= control target key start
LH: loop header
LB: loop body
LE: loop exit
PB: predicated region body
PF: predicated region fallthrough
CT: control target
= control target key end

     0   :  { %s1078_s1 = inlined_call_operand.vmem [shape: bf16[512,128], index: 1, kind: input, shape index: {}]   ;;  %s1079_s2 = inlined_call_operand.vmem [shape: f32[1,128], index: 2, kind: input, shape index: {}]   ;;  %s1080_s0 = inlined_call_operand.vmem [shape: bf16[72,512], index: 0, kind: input, shape index: {}]   ;;  %s1081_s3 = inlined_call_operand.vmem [shape: bf16[72,128], index: 3, kind: output, shape index: {}]  }
   0x1   :  { %v782_v0 = vld [vmem:[%s1078_s1 + $0x38] sm:$0xff]  ;;  %v781_v4 = vld [vmem:[%s1078_s1 + $0x30] sm:$0xff]  ;;  %v780_v8 = vld [vmem:[%s1078_s1 + $0x28] sm:$0xff] }
   0x2   :  { %v790_v1 = vld [vmem:[%s1078_s1 + $0x78] sm:$0xff]  ;;  %386 = vmatpush.bf16.msra.mxu0 %v782_v0  ;;  %v789_v5 = vld [vmem:[%s1078_s1 + $0x70] sm:$0xff]  ;;  %v788_v9 = vld [vmem:[%s1078_s1 + $0x68] sm:$0xff] }
   0x3   :  { %v798_v2 = vld [vmem:[%s1078_s1 + $0xb8] sm:$0xff]  ;;  %419 = vmatpush.bf16.msra.mxu1 %v790_v1  ;;  %v797_v6 = vld [vmem:[%s1078_s1 + $0xb0] sm:$0xff]  ;;  %v796_v10 = vld [vmem:[%s1078_s1 + $0xa8] sm:$0xff] }
   0x4   :  { %v806_v3 = vld [vmem:[%s1078_s1 + $0xf8] sm:$0xff]  ;;  %452 = vmatpush.bf16.msra.mxu2 %v798_v2  ;;  %v805_v7 = vld [vmem:[%s1078_s1 + $0xf0] sm:$0xff]  ;;  %v804_v11 = vld [vmem:[%s1078_s1 + $0xe8] sm:$0xff] }
   0x5   :  { %485 = vmatpush.bf16.msra.mxu3 %v806_v3  ;;  %v779_v12 = vld [vmem:[%s1078_s1 + $0x20] sm:$0xff]  ;;  %v778_v16 = vld [vmem:[%s1078_s1 + $0x18] sm:$0xff]  ;;  %v777_v20 = vld [vmem:[%s1078_s1 + $0x10] sm:$0xff] }
   0x6   :  { %387 = vmatpush.bf16.msra.mxu0 %v781_v4  ;;  %v787_v13 = vld [vmem:[%s1078_s1 + $0x60] sm:$0xff]  ;;  %v786_v17 = vld [vmem:[%s1078_s1 + $0x58] sm:$0xff]  ;;  %v785_v21 = vld [vmem:[%s1078_s1 + $0x50] sm:$0xff] }
   0x7   :  { %420 = vmatpush.bf16.msra.mxu1 %v789_v5  ;;  %v795_v14 = vld [vmem:[%s1078_s1 + $0xa0] sm:$0xff]  ;;  %v794_v18 = vld [vmem:[%s1078_s1 + $0x98] sm:$0xff]  ;;  %v793_v22 = vld [vmem:[%s1078_s1 + $0x90] sm:$0xff] }
   0x8   :  { %453 = vmatpush.bf16.msra.mxu2 %v797_v6  ;;  %v803_v15 = vld [vmem:[%s1078_s1 + $0xe0] sm:$0xff]  ;;  %v802_v19 = vld [vmem:[%s1078_s1 + $0xd8] sm:$0xff]  ;;  %v801_v23 = vld [vmem:[%s1078_s1 + $0xd0] sm:$0xff] }
   0x9   :  { %486 = vmatpush.bf16.msra.mxu3 %v805_v7  ;;  %v776_v24 = vld [vmem:[%s1078_s1 + $0x8] sm:$0xff]  ;;  %v775_v28 = vld [vmem:[%s1078_s1] sm:$0xff]  ;;  %v761_v33 = vld [vmem:[%s1080_s0 + $0xc] sm:$0xf0] }
   0xa   :  { %388 = vmatpush.bf16.msra.mxu0 %v780_v8  ;;  %v784_v25 = vld [vmem:[%s1078_s1 + $0x48] sm:$0xff]  ;;  %v783_v29 = vld [vmem:[%s1078_s1 + $0x40] sm:$0xff]  ;;  %v571_v35 = vld [vmem:[%s1080_s0 + $0x10] sm:$0xf0] }
   0xb   :  { %421 = vmatpush.bf16.msra.mxu1 %v788_v9  ;;  %v792_v26 = vld [vmem:[%s1078_s1 + $0x88] sm:$0xff]  ;;  %v791_v30 = vld [vmem:[%s1078_s1 + $0x80] sm:$0xff]  ;;  %v762_v37 = vld [vmem:[%s1080_s0 + $0x14] sm:$0xf0] }
   0xc   :  { %454 = vmatpush.bf16.msra.mxu2 %v796_v10  ;;  %v800_v27 = vld [vmem:[%s1078_s1 + $0xc8] sm:$0xff]  ;;  %v799_v31 = vld [vmem:[%s1078_s1 + $0xc0] sm:$0xff]  ;;  %v579_v39 = vld [vmem:[%s1080_s0 + $0x18] sm:$0xf0] }
   0xd   :  { %487 = vmatpush.bf16.msra.mxu3 %v804_v11  ;;  %v569_v32 = vld [vmem:[%s1080_s0] sm:$0xf]  ;;  %v759_v34 = vld [vmem:[%s1080_s0 + $0x4] sm:$0xf]  ;;  %v577_v36 = vld [vmem:[%s1080_s0 + $0x8] sm:$0xf] }
   0xe   :  { %389 = vmatpush.bf16.msra.mxu0 %v779_v12  ;;  %v760_v38 = vld [vmem:[%s1080_s0 + $0xc] sm:$0xf]  ;;  %v570_v40 = vor.u32 %v761_v33, %v569_v32  ;;  %v574_v41 = vor.u32 %v759_v34, %v571_v35  ;;  %v578_v42 = vor.u32 %v762_v37, %v577_v36  ;;  %v585_v44 = vld [vmem:[%s1080_s0 + $0x20] sm:$0xf]  ;;  %v765_v45 = vld [vmem:[%s1080_s0 + $0x2c] sm:$0xf0] }
   0xf   :  { %422 = vmatpush.bf16.msra.mxu1 %v787_v13  ;;  %v582_v43 = vor.u32 %v760_v38, %v579_v39  ;;  %v763_v46 = vld [vmem:[%s1080_s0 + $0x24] sm:$0xf]  ;;  %v587_v47 = vld [vmem:[%s1080_s0 + $0x30] sm:$0xf0]  ;;  %v593_v48 = vld [vmem:[%s1080_s0 + $0x28] sm:$0xf]  ;;  %v586_v52 = vor.u32 %v765_v45, %v585_v44 }
  0x10   :  { %455 = vmatpush.bf16.msra.mxu2 %v795_v14  ;;  %v766_v49 = vld [vmem:[%s1080_s0 + $0x34] sm:$0xf0]  ;;  %v764_v50 = vld [vmem:[%s1080_s0 + $0x2c] sm:$0xf]  ;;  %v595_v51 = vld [vmem:[%s1080_s0 + $0x38] sm:$0xf0]  ;;  %v590_v53 = vor.u32 %v763_v46, %v587_v47 }
  0x11   :  { %488 = vmatpush.bf16.msra.mxu3 %v803_v15  ;;  %v594_v54 = vor.u32 %v766_v49, %v593_v48  ;;  %v598_v55 = vor.u32 %v764_v50, %v595_v51  ;;  %v601_v56 = vld [vmem:[%s1080_s0 + $0x40] sm:$0xf]  ;;  %v769_v57 = vld [vmem:[%s1080_s0 + $0x4c] sm:$0xf0]  ;;  %v767_v58 = vld [vmem:[%s1080_s0 + $0x44] sm:$0xf] }
  0x12   :  { %390 = vmatpush.bf16.msra.mxu0 %v778_v16  ;;  %v603_v59 = vld [vmem:[%s1080_s0 + $0x50] sm:$0xf0]  ;;  %v609_v60 = vld [vmem:[%s1080_s0 + $0x48] sm:$0xf]  ;;  %v770_v61 = vld [vmem:[%s1080_s0 + $0x54] sm:$0xf0]  ;;  %v602_v0 = vor.u32 %v769_v57, %v601_v56 }
  0x13   :  { %423 = vmatpush.bf16.msra.mxu1 %v786_v17  ;;  %v768_v62 = vld [vmem:[%s1080_s0 + $0x4c] sm:$0xf]  ;;  %v611_v63 = vld [vmem:[%s1080_s0 + $0x58] sm:$0xf0]  ;;  %v606_v1 = vor.u32 %v767_v58, %v603_v59  ;;  %v610_v2 = vor.u32 %v770_v61, %v609_v60  ;;  %v617_v4 = vld [vmem:[%s1080_s0 + $0x60] sm:$0xf] }
  0x14   :  { %456 = vmatpush.bf16.msra.mxu2 %v794_v18  ;;  %v614_v3 = vor.u32 %v768_v62, %v611_v63  ;;  %v773_v5 = vld [vmem:[%s1080_s0 + $0x6c] sm:$0xf0]  ;;  %v771_v6 = vld [vmem:[%s1080_s0 + $0x64] sm:$0xf]  ;;  %v619_v7 = vld [vmem:[%s1080_s0 + $0x70] sm:$0xf0] }
  0x15   :  { %489 = vmatpush.bf16.msra.mxu3 %v802_v19  ;;  %v625_v8 = vld [vmem:[%s1080_s0 + $0x68] sm:$0xf]  ;;  %v774_v9 = vld [vmem:[%s1080_s0 + $0x74] sm:$0xf0]  ;;  %v772_v10 = vld [vmem:[%s1080_s0 + $0x6c] sm:$0xf]  ;;  %v618_v12 = vor.u32 %v773_v5, %v617_v4  ;;  %v622_v13 = vor.u32 %v771_v6, %v619_v7 }
  0x16   :  { %391 = vmatpush.bf16.msra.mxu0 %v777_v20  ;;  %v627_v11 = vld [vmem:[%s1080_s0 + $0x78] sm:$0xf0]  ;;  %v626_v14 = vor.u32 %v774_v9, %v625_v8  ;;  %v30_v16 = vld [vmem:[%s1080_s0 + $0x80] sm:$0xff]  ;;  %v31_v17 = vld [vmem:[%s1080_s0 + $0x88] sm:$0xff] }
  0x17   :  { %424 = vmatpush.bf16.msra.mxu1 %v785_v21  ;;  %v630_v15 = vor.u32 %v772_v10, %v627_v11  ;;  %v150_v18 = vunpack.c.l.b16 %v30_v16  ;;  %v151_v19 = vunpack.c.h.b16 %v30_v16  ;;  %v152_v20 = vunpack.c.l.b16 %v31_v17 }
  0x18   :  { %457 = vmatpush.bf16.msra.mxu2 %v793_v22  ;;  %v153_v21 = vunpack.c.h.b16 %v31_v17 }
  0x19   :  { %490 = vmatpush.bf16.msra.mxu3 %v801_v23  ;;  %v170_v22 = vpack.c.b16 %v150_v18, %v150_v18  ;;  %v171_v23 = vpack.c.b16 %v151_v19, %v151_v19 }
  0x1a   :  { %392 = vmatpush.bf16.msra.mxu0 %v776_v24  ;;  %v172_v24 = vpack.c.b16 %v152_v20, %v152_v20 }
  0x1b   :  { %425 = vmatpush.bf16.msra.mxu1 %v784_v25  ;;  %v173_v25 = vpack.c.b16 %v153_v21, %v153_v21 }
  0x1c   :  { %458 = vmatpush.bf16.msra.mxu2 %v792_v26  ;;  %v1052_v26 = vld [vmem:[%s1079_s2] ss:$0 sm:$0xff] }
  0x1d   :  { %491 = vmatpush.bf16.msra.mxu3 %v800_v27 }
  0x1e   :  { %393 = vmatpush.bf16.msra.mxu0 %v775_v28 }
  0x1f   :  { %426 = vmatpush.bf16.msra.mxu1 %v783_v29 }
  0x20   :  { %459 = vmatpush.bf16.msra.mxu2 %v791_v30 }
  0x21   :  { %492 = vmatpush.bf16.msra.mxu3 %v799_v31  ;;  %394 = vmatmul.bf16.vlgmr.msra.gmra.mxu0 %v570_v40 }
  0x22   :  { %427 = vmatmul.bf16.vlgmr.msra.gmra.mxu1 %v574_v41 }
  0x23   :  { %460 = vmatmul.bf16.vlgmr.msra.gmra.mxu2 %v578_v42 }
  0x24   :  { %493 = vmatmul.bf16.vlgmr.msra.gmra.mxu3 %v582_v43 }
  0x31   :  { %399 = vmatmul.bf16.gmra.mxu0 %v586_v52 }
  0x32   :  { %432 = vmatmul.bf16.gmra.mxu1 %v590_v53 }
  0x33   :  { %465 = vmatmul.bf16.gmra.mxu2 %v594_v54 }
  0x34   :  { %498 = vmatmul.bf16.gmra.mxu3 %v598_v55 }
  0x41   :  { %404 = vmatmul.bf16.gmra.mxu0 %v602_v0 }
  0x42   :  { %437 = vmatmul.bf16.gmra.mxu1 %v606_v1 }
  0x43   :  { %470 = vmatmul.bf16.gmra.mxu2 %v610_v2 }
  0x44   :  { %503 = vmatmul.bf16.gmra.mxu3 %v614_v3 }
  0x51   :  { %409 = vmatmul.bf16.gmra.mxu0 %v618_v12 }
  0x52   :  { %442 = vmatmul.bf16.gmra.mxu1 %v622_v13 }
  0x53   :  { %475 = vmatmul.bf16.gmra.mxu2 %v626_v14 }
  0x54   :  { %508 = vmatmul.bf16.gmra.mxu3 %v630_v15 }
  0x61   :  { %414 = vmatmul.bf16.gmra.mxu0 %v170_v22 }
  0x62   :  { %447 = vmatmul.bf16.gmra.mxu1 %v171_v23 }
  0x63   :  { %480 = vmatmul.bf16.gmra.mxu2 %v172_v24 }
  0x64   :  { %513 = vmatmul.bf16.gmra.mxu3 %v173_v25 }
  0x9e   :  { %v395_v27 = vpop.f32.mrf.mxu0 }
  0x9f   :  { %v428_v28 = vpop.f32.mrf.mxu1  ;;  %v396_v29 = vadd.f32 %v1052_v26, %v395_v27 }
  0xa1   :  { %v429_v30 = vadd.f32 %v428_v28, %v396_v29 }
  0xa6   :  { %v461_v31 = vpop.f32.mrf.mxu2  ;;  %v397_v33 = vpop.f32.mrf.mxu0 }
  0xa7   :  { %v494_v32 = vpop.f32.mrf.mxu3  ;;  %v430_v34 = vpop.f32.mrf.mxu1  ;;  %v462_v35 = vadd.f32 %v461_v31, %v429_v30  ;;  %v398_v36 = vadd.f32 %v1052_v26, %v397_v33 }
  0xa9   :  { %v495_v37 = vadd.f32 %v494_v32, %v462_v35  ;;  %v431_v38 = vadd.f32 %v430_v34, %v398_v36 }
  0xab   :  { %v527_v44 = vmul.f32 0.01, %v495_v37  ;;  %vm518_vm0 = vcmp.gt.f32.partialorder %v495_v37, 0.0 }
  0xad   :  { %v536_v48 = vsel %vm518_vm0, %v495_v37, %v527_v44 }
  0xae   :  { %v463_v39 = vpop.f32.mrf.mxu2  ;;  %v400_v42 = vpop.f32.mrf.mxu0 }
  0xaf   :  { %v496_v40 = vpop.f32.mrf.mxu3  ;;  %v464_v41 = vadd.f32 %v463_v39, %v431_v38  ;;  %v433_v43 = vpop.f32.mrf.mxu1  ;;  %v401_v46 = vadd.f32 %v1052_v26, %v400_v42 }
  0xb1   :  { %v497_v45 = vadd.f32 %v496_v40, %v464_v41  ;;  %v434_v50 = vadd.f32 %v433_v43, %v401_v46 }
  0xb3   :  { %vm519_vm1 = vcmp.gt.f32.partialorder %v497_v45, 0.0  ;;  %v528_v47 = vmul.f32 0.01, %v497_v45 }
  0xb5   :  { %v537_v49 = vsel %vm519_vm1, %v497_v45, %v528_v47 }
  0xb6   :  { %v810_v51 = vpack.c.bf16 %v537_v49, %v536_v48  ;;  %v466_v52 = vpop.f32.mrf.mxu2  ;;  %v402_v54 = vpop.f32.mrf.mxu0 }
  0xb7   :  { %v499_v53 = vpop.f32.mrf.mxu3  ;;  %v435_v55 = vpop.f32.mrf.mxu1  ;;  %v467_v56 = vadd.f32 %v466_v52, %v434_v50  ;;  %v403_v57 = vadd.f32 %v1052_v26, %v402_v54 }
  0xb8   :  { %811 = vst [vmem:[%s1081_s3] sm:$0xff] %v810_v51  }
  0xb9   :  { %v500_v58 = vadd.f32 %v499_v53, %v467_v56  ;;  %v436_v59 = vadd.f32 %v435_v55, %v403_v57 }
  0xbb   :  { %v529_v1 = vmul.f32 0.01, %v500_v58  ;;  %vm520_vm2 = vcmp.gt.f32.partialorder %v500_v58, 0.0 }
  0xbd   :  { %v538_v5 = vsel %vm520_vm2, %v500_v58, %v529_v1 }
  0xbe   :  { %v468_v60 = vpop.f32.mrf.mxu2  ;;  %v405_v63 = vpop.f32.mrf.mxu0 }
  0xbf   :  { %v501_v61 = vpop.f32.mrf.mxu3  ;;  %v469_v62 = vadd.f32 %v468_v60, %v436_v59  ;;  %v438_v0 = vpop.f32.mrf.mxu1  ;;  %v406_v3 = vadd.f32 %v1052_v26, %v405_v63 }
  0xc1   :  { %v502_v2 = vadd.f32 %v501_v61, %v469_v62  ;;  %v439_v7 = vadd.f32 %v438_v0, %v406_v3 }
  0xc3   :  { %vm521_vm3 = vcmp.gt.f32.partialorder %v502_v2, 0.0  ;;  %v530_v4 = vmul.f32 0.01, %v502_v2 }
  0xc5   :  { %v539_v6 = vsel %vm521_vm3, %v502_v2, %v530_v4 }
  0xc6   :  { %v815_v8 = vpack.c.bf16 %v539_v6, %v538_v5  ;;  %v471_v9 = vpop.f32.mrf.mxu2  ;;  %v407_v11 = vpop.f32.mrf.mxu0 }
  0xc7   :  { %v504_v10 = vpop.f32.mrf.mxu3  ;;  %v440_v12 = vpop.f32.mrf.mxu1  ;;  %v472_v13 = vadd.f32 %v471_v9, %v439_v7  ;;  %v408_v14 = vadd.f32 %v1052_v26, %v407_v11 }
  0xc8   :  { %827 = vst [vmem:[%s1081_s3 + $0x8] sm:$0xff] %v815_v8  }
  0xc9   :  { %v505_v15 = vadd.f32 %v504_v10, %v472_v13  ;;  %v441_v16 = vadd.f32 %v440_v12, %v408_v14 }
  0xcb   :  { %v531_v22 = vmul.f32 0.01, %v505_v15  ;;  %vm522_vm4 = vcmp.gt.f32.partialorder %v505_v15, 0.0 }
  0xcd   :  { %v540_v27 = vsel %vm522_vm4, %v505_v15, %v531_v22 }
  0xce   :  { %v473_v17 = vpop.f32.mrf.mxu2  ;;  %v410_v20 = vpop.f32.mrf.mxu0 }
  0xcf   :  { %v506_v18 = vpop.f32.mrf.mxu3  ;;  %v474_v19 = vadd.f32 %v473_v17, %v441_v16  ;;  %v443_v21 = vpop.f32.mrf.mxu1  ;;  %v411_v24 = vadd.f32 %v1052_v26, %v410_v20 }
  0xd1   :  { %v507_v23 = vadd.f32 %v506_v18, %v474_v19  ;;  %v444_v29 = vadd.f32 %v443_v21, %v411_v24 }
  0xd3   :  { %vm523_vm5 = vcmp.gt.f32.partialorder %v507_v23, 0.0  ;;  %v532_v25 = vmul.f32 0.01, %v507_v23 }
  0xd5   :  { %v541_v28 = vsel %vm523_vm5, %v507_v23, %v532_v25 }
  0xd6   :  { %v820_v30 = vpack.c.bf16 %v541_v28, %v540_v27  ;;  %v476_v31 = vpop.f32.mrf.mxu2  ;;  %v412_v33 = vpop.f32.mrf.mxu0 }
  0xd7   :  { %v509_v32 = vpop.f32.mrf.mxu3  ;;  %v445_v34 = vpop.f32.mrf.mxu1  ;;  %v477_v35 = vadd.f32 %v476_v31, %v444_v29  ;;  %v413_v36 = vadd.f32 %v1052_v26, %v412_v33 }
  0xd8   :  { %828 = vst [vmem:[%s1081_s3 + $0x10] sm:$0xff] %v820_v30  }
  0xd9   :  { %v510_v37 = vadd.f32 %v509_v32, %v477_v35  ;;  %v446_v38 = vadd.f32 %v445_v34, %v413_v36 }
  0xdb   :  { %v533_v45 = vmul.f32 0.01, %v510_v37  ;;  %vm524_vm6 = vcmp.gt.f32.partialorder %v510_v37, 0.0 }
  0xdd   :  { %v542_v49 = vsel %vm524_vm6, %v510_v37, %v533_v45 }
  0xde   :  { %v478_v39 = vpop.f32.mrf.mxu2  ;;  %v415_v42 = vpop.f32.mrf.mxu0 }
  0xdf   :  { %v511_v40 = vpop.f32.mrf.mxu3  ;;  %v479_v41 = vadd.f32 %v478_v39, %v446_v38  ;;  %v448_v43 = vpop.f32.mrf.mxu1  ;;  %v416_v44 = vadd.f32 %v1052_v26, %v415_v42 }
  0xe1   :  { %v512_v46 = vadd.f32 %v511_v40, %v479_v41  ;;  %v449_v48 = vadd.f32 %v448_v43, %v416_v44 }
  0xe3   :  { %vm525_vm7 = vcmp.gt.f32.partialorder %v512_v46, 0.0  ;;  %v534_v47 = vmul.f32 0.01, %v512_v46 }
  0xe5   :  { %v543_v50 = vsel %vm525_vm7, %v512_v46, %v534_v47 }
  0xe6   :  { %v825_v51 = vpack.c.bf16 %v543_v50, %v542_v49  ;;  %v481_v52 = vpop.f32.mrf.mxu2  ;;  %v417_v55 = vpop.f32.mrf.mxu0 }
  0xe7   :  { %v514_v53 = vpop.f32.mrf.mxu3  ;;  %v482_v54 = vadd.f32 %v481_v52, %v449_v48  ;;  %v450_v56 = vpop.f32.mrf.mxu1 }
  0xe8   :  { %829 = vst [vmem:[%s1081_s3 + $0x18] sm:$0xff] %v825_v51  }
  0xe9   :  { %v515_v57 = vadd.f32 %v514_v53, %v482_v54 }
  0xeb   :  { %vm526_vm8 = vcmp.gt.f32.partialorder %v515_v57, 0.0  ;;  %v535_v26 = vmul.f32 0.01, %v515_v57 }
  0xed   :  { %v544_v58 = vsel %vm526_vm8, %v515_v57, %v535_v26 }
  0xee   :  { %v553_v59 = vpack.c.bf16 %v544_v58, %v544_v58  ;;  %v483_v60 = vpop.f32.mrf.mxu2 }
  0xef   :  { %v516_v61 = vpop.f32.mrf.mxu3 }
  0xf0   :  { %562 = vst [vmem:[%s1081_s3 + $0x20] sm:$0xf] %v553_v59 }

// kernel: image_only_net_forward.6
= control target key start
LH: loop header
LB: loop body
LE: loop exit
PB: predicated region body
PF: predicated region fallthrough
CT: control target
= control target key end

     0   :  { %s640_s1 = inlined_call_operand.vmem [shape: bf16[512,128], index: 1, kind: input, shape index: {}]   ;;  %s641_s2 = inlined_call_operand.vmem [shape: f32[1,128], index: 2, kind: input, shape index: {}]   ;;  %s642_s0 = inlined_call_operand.vmem [shape: bf16[8,512], index: 0, kind: input, shape index: {}]   ;;  %s643_s3 = inlined_call_operand.vmem [shape: bf16[8,128], index: 3, kind: output, shape index: {}]  }
   0x1   :  { %v486_v0 = vld [vmem:[%s640_s1 + $0x38] sm:$0xff]  ;;  %v485_v4 = vld [vmem:[%s640_s1 + $0x30] sm:$0xff]  ;;  %v484_v8 = vld [vmem:[%s640_s1 + $0x28] sm:$0xff] }
   0x2   :  { %v494_v1 = vld [vmem:[%s640_s1 + $0x78] sm:$0xff]  ;;  %290 = vmatpush.bf16.msra.mxu0 %v486_v0  ;;  %v493_v5 = vld [vmem:[%s640_s1 + $0x70] sm:$0xff]  ;;  %v492_v9 = vld [vmem:[%s640_s1 + $0x68] sm:$0xff] }
   0x3   :  { %v502_v2 = vld [vmem:[%s640_s1 + $0xb8] sm:$0xff]  ;;  %303 = vmatpush.bf16.msra.mxu1 %v494_v1  ;;  %v501_v6 = vld [vmem:[%s640_s1 + $0xb0] sm:$0xff]  ;;  %v500_v10 = vld [vmem:[%s640_s1 + $0xa8] sm:$0xff] }
   0x4   :  { %v510_v3 = vld [vmem:[%s640_s1 + $0xf8] sm:$0xff]  ;;  %316 = vmatpush.bf16.msra.mxu2 %v502_v2  ;;  %v509_v7 = vld [vmem:[%s640_s1 + $0xf0] sm:$0xff]  ;;  %v508_v11 = vld [vmem:[%s640_s1 + $0xe8] sm:$0xff] }
   0x5   :  { %329 = vmatpush.bf16.msra.mxu3 %v510_v3  ;;  %v483_v12 = vld [vmem:[%s640_s1 + $0x20] sm:$0xff]  ;;  %v482_v16 = vld [vmem:[%s640_s1 + $0x18] sm:$0xff]  ;;  %v481_v20 = vld [vmem:[%s640_s1 + $0x10] sm:$0xff] }
   0x6   :  { %291 = vmatpush.bf16.msra.mxu0 %v485_v4  ;;  %v491_v13 = vld [vmem:[%s640_s1 + $0x60] sm:$0xff]  ;;  %v490_v17 = vld [vmem:[%s640_s1 + $0x58] sm:$0xff]  ;;  %v489_v21 = vld [vmem:[%s640_s1 + $0x50] sm:$0xff] }
   0x7   :  { %304 = vmatpush.bf16.msra.mxu1 %v493_v5  ;;  %v499_v14 = vld [vmem:[%s640_s1 + $0xa0] sm:$0xff]  ;;  %v498_v18 = vld [vmem:[%s640_s1 + $0x98] sm:$0xff]  ;;  %v497_v22 = vld [vmem:[%s640_s1 + $0x90] sm:$0xff] }
   0x8   :  { %317 = vmatpush.bf16.msra.mxu2 %v501_v6  ;;  %v507_v15 = vld [vmem:[%s640_s1 + $0xe0] sm:$0xff]  ;;  %v506_v19 = vld [vmem:[%s640_s1 + $0xd8] sm:$0xff]  ;;  %v505_v23 = vld [vmem:[%s640_s1 + $0xd0] sm:$0xff] }
   0x9   :  { %330 = vmatpush.bf16.msra.mxu3 %v509_v7  ;;  %v480_v24 = vld [vmem:[%s640_s1 + $0x8] sm:$0xff]  ;;  %v14_v26 = vld [vmem:[%s642_s0] sm:$0xff] }
   0xa   :  { %292 = vmatpush.bf16.msra.mxu0 %v484_v8  ;;  %v488_v25 = vld [vmem:[%s640_s1 + $0x48] sm:$0xff]  ;;  %v86_v30 = vunpack.c.l.b16 %v14_v26  ;;  %v87_v31 = vunpack.c.h.b16 %v14_v26  ;;  %v479_v32 = vld [vmem:[%s640_s1] sm:$0xff] }
   0xb   :  { %305 = vmatpush.bf16.msra.mxu1 %v492_v9  ;;  %v496_v27 = vld [vmem:[%s640_s1 + $0x88] sm:$0xff]  ;;  %v487_v33 = vld [vmem:[%s640_s1 + $0x40] sm:$0xff] }
   0xc   :  { %318 = vmatpush.bf16.msra.mxu2 %v500_v10  ;;  %v504_v28 = vld [vmem:[%s640_s1 + $0xc8] sm:$0xff]  ;;  %v495_v36 = vld [vmem:[%s640_s1 + $0x80] sm:$0xff]  ;;  %v90_v38 = vpack.c.b16 %v86_v30, %v86_v30  ;;  %v91_v39 = vpack.c.b16 %v87_v31, %v87_v31 }
   0xd   :  { %331 = vmatpush.bf16.msra.mxu3 %v508_v11  ;;  %v15_v29 = vld [vmem:[%s642_s0 + $0x8] sm:$0xff]  ;;  %v503_v37 = vld [vmem:[%s640_s1 + $0xc0] sm:$0xff] }
   0xe   :  { %293 = vmatpush.bf16.msra.mxu0 %v483_v12  ;;  %v88_v34 = vunpack.c.l.b16 %v15_v29  ;;  %v89_v35 = vunpack.c.h.b16 %v15_v29  ;;  %v511_v42 = vld [vmem:[%s641_s2] ss:$0 sm:$0xff] }
   0xf   :  { %306 = vmatpush.bf16.msra.mxu1 %v491_v13 }
  0x10   :  { %319 = vmatpush.bf16.msra.mxu2 %v499_v14  ;;  %v92_v40 = vpack.c.b16 %v88_v34, %v88_v34  ;;  %v93_v41 = vpack.c.b16 %v89_v35, %v89_v35 }
  0x11   :  { %332 = vmatpush.bf16.msra.mxu3 %v507_v15 }
  0x12   :  { %294 = vmatpush.bf16.msra.mxu0 %v482_v16 }
  0x13   :  { %307 = vmatpush.bf16.msra.mxu1 %v490_v17 }
  0x14   :  { %320 = vmatpush.bf16.msra.mxu2 %v498_v18 }
  0x15   :  { %333 = vmatpush.bf16.msra.mxu3 %v506_v19 }
  0x16   :  { %295 = vmatpush.bf16.msra.mxu0 %v481_v20 }
  0x17   :  { %308 = vmatpush.bf16.msra.mxu1 %v489_v21 }
  0x18   :  { %321 = vmatpush.bf16.msra.mxu2 %v497_v22 }
  0x19   :  { %334 = vmatpush.bf16.msra.mxu3 %v505_v23 }
  0x1a   :  { %296 = vmatpush.bf16.msra.mxu0 %v480_v24 }
  0x1b   :  { %309 = vmatpush.bf16.msra.mxu1 %v488_v25 }
  0x1c   :  { %322 = vmatpush.bf16.msra.mxu2 %v496_v27 }
  0x1d   :  { %335 = vmatpush.bf16.msra.mxu3 %v504_v28 }
  0x1e   :  { %297 = vmatpush.bf16.msra.mxu0 %v479_v32 }
  0x1f   :  { %310 = vmatpush.bf16.msra.mxu1 %v487_v33 }
  0x20   :  { %323 = vmatpush.bf16.msra.mxu2 %v495_v36 }
  0x21   :  { %336 = vmatpush.bf16.msra.mxu3 %v503_v37  ;;  %298 = vmatmul.bf16.vlgmr.msra.gmra.mxu0 %v90_v38 }
  0x22   :  { %311 = vmatmul.bf16.vlgmr.msra.gmra.mxu1 %v91_v39 }
  0x23   :  { %324 = vmatmul.bf16.vlgmr.msra.gmra.mxu2 %v92_v40 }
  0x24   :  { %337 = vmatmul.bf16.vlgmr.msra.gmra.mxu3 %v93_v41 }
  0x9e   :  { %v299_v43 = vpop.f32.mrf.mxu0 }
  0x9f   :  { %v312_v44 = vpop.f32.mrf.mxu1  ;;  %v300_v45 = vadd.f32 %v511_v42, %v299_v43 }
  0xa1   :  { %v313_v46 = vadd.f32 %v312_v44, %v300_v45 }
  0xa6   :  { %v325_v47 = vpop.f32.mrf.mxu2  ;;  %v301_v50 = vpop.f32.mrf.mxu0 }
  0xa7   :  { %v338_v48 = vpop.f32.mrf.mxu3  ;;  %v326_v49 = vadd.f32 %v325_v47, %v313_v46  ;;  %v314_v51 = vpop.f32.mrf.mxu1 }
  0xa9   :  { %v339_v52 = vadd.f32 %v338_v48, %v326_v49 }
  0xab   :  { %vm342_vm0 = vcmp.gt.f32.partialorder %v339_v52, 0.0  ;;  %v343_v53 = vmul.f32 0.01, %v339_v52 }
  0xad   :  { %v344_v54 = vsel %vm342_vm0, %v339_v52, %v343_v53 }
  0xae   :  { %v345_v55 = vpack.c.bf16 %v344_v54, %v344_v54  ;;  %v327_v56 = vpop.f32.mrf.mxu2 }
  0xaf   :  { %v340_v57 = vpop.f32.mrf.mxu3 }
  0xb0   :  { %346 = vst [vmem:[%s643_s3] sm:$0xf] %v345_v55 }

// kernel: image_only_net_forward.7
= control target key start
LH: loop header
LB: loop body
LE: loop exit
PB: predicated region body
PF: predicated region fallthrough
CT: control target
= control target key end

     0   :  { %s970_s1 = inlined_call_operand.vmem [shape: bf16[512,128], index: 1, kind: input, shape index: {}]   ;;  %s971_s2 = inlined_call_operand.vmem [shape: f32[1,128], index: 2, kind: input, shape index: {}]   ;;  %s972_s0 = inlined_call_operand.vmem [shape: bf16[8,512], index: 0, kind: input, shape index: {}]   ;;  %s973_s3 = inlined_call_operand.vmem [shape: bf16[128,128], index: 3, kind: input, shape index: {}]   ;;  %s974_s4 = inlined_call_operand.vmem [shape: f32[1,128], index: 4, kind: input, shape index: {}]   ;;  %s975_s5 = inlined_call_operand.vmem [shape: bf16[128,128], index: 5, kind: input, shape index: {}]   ;;  %s976_s6 = inlined_call_operand.vmem [shape: f32[1,128], index: 6, kind: input, shape index: {}]   ;;  %s977_s7 = inlined_call_operand.vmem [shape: f32[8,128], index: 7, kind: output, shape index: {}]  }
   0x1   :  { %v724_v0 = vld [vmem:[%s970_s1 + $0x38] sm:$0xff]  ;;  %v723_v4 = vld [vmem:[%s970_s1 + $0x30] sm:$0xff]  ;;  %v722_v8 = vld [vmem:[%s970_s1 + $0x28] sm:$0xff] }
   0x2   :  { %v732_v1 = vld [vmem:[%s970_s1 + $0x78] sm:$0xff]  ;;  %302 = vmatpush.bf16.msra.mxu0 %v724_v0  ;;  %v731_v5 = vld [vmem:[%s970_s1 + $0x70] sm:$0xff]  ;;  %v730_v9 = vld [vmem:[%s970_s1 + $0x68] sm:$0xff] }
   0x3   :  { %v740_v2 = vld [vmem:[%s970_s1 + $0xb8] sm:$0xff]  ;;  %315 = vmatpush.bf16.msra.mxu1 %v732_v1  ;;  %v739_v6 = vld [vmem:[%s970_s1 + $0xb0] sm:$0xff]  ;;  %v738_v10 = vld [vmem:[%s970_s1 + $0xa8] sm:$0xff] }
   0x4   :  { %v748_v3 = vld [vmem:[%s970_s1 + $0xf8] sm:$0xff]  ;;  %328 = vmatpush.bf16.msra.mxu2 %v740_v2  ;;  %v747_v7 = vld [vmem:[%s970_s1 + $0xf0] sm:$0xff]  ;;  %v746_v11 = vld [vmem:[%s970_s1 + $0xe8] sm:$0xff] }
   0x5   :  { %341 = vmatpush.bf16.msra.mxu3 %v748_v3  ;;  %v721_v12 = vld [vmem:[%s970_s1 + $0x20] sm:$0xff]  ;;  %v720_v16 = vld [vmem:[%s970_s1 + $0x18] sm:$0xff]  ;;  %v719_v20 = vld [vmem:[%s970_s1 + $0x10] sm:$0xff] }
   0x6   :  { %303 = vmatpush.bf16.msra.mxu0 %v723_v4  ;;  %v729_v13 = vld [vmem:[%s970_s1 + $0x60] sm:$0xff]  ;;  %v728_v17 = vld [vmem:[%s970_s1 + $0x58] sm:$0xff]  ;;  %v727_v21 = vld [vmem:[%s970_s1 + $0x50] sm:$0xff] }
   0x7   :  { %316 = vmatpush.bf16.msra.mxu1 %v731_v5  ;;  %v737_v14 = vld [vmem:[%s970_s1 + $0xa0] sm:$0xff]  ;;  %v736_v18 = vld [vmem:[%s970_s1 + $0x98] sm:$0xff]  ;;  %v735_v22 = vld [vmem:[%s970_s1 + $0x90] sm:$0xff] }
   0x8   :  { %329 = vmatpush.bf16.msra.mxu2 %v739_v6  ;;  %v745_v15 = vld [vmem:[%s970_s1 + $0xe0] sm:$0xff]  ;;  %v744_v19 = vld [vmem:[%s970_s1 + $0xd8] sm:$0xff]  ;;  %v743_v23 = vld [vmem:[%s970_s1 + $0xd0] sm:$0xff] }
   0x9   :  { %342 = vmatpush.bf16.msra.mxu3 %v747_v7  ;;  %v718_v24 = vld [vmem:[%s970_s1 + $0x8] sm:$0xff]  ;;  %v26_v26 = vld [vmem:[%s972_s0] sm:$0xff]  ;;  %v756_v38 = vld [vmem:[%s973_s3 + $0x38] sm:$0xff] }
   0xa   :  { %304 = vmatpush.bf16.msra.mxu0 %v722_v8  ;;  %v726_v25 = vld [vmem:[%s970_s1 + $0x48] sm:$0xff]  ;;  %v98_v30 = vunpack.c.l.b16 %v26_v26  ;;  %v99_v31 = vunpack.c.h.b16 %v26_v26  ;;  %v717_v32 = vld [vmem:[%s970_s1] sm:$0xff]  ;;  %v755_v43 = vld [vmem:[%s973_s3 + $0x30] sm:$0xff] }
   0xb   :  { %317 = vmatpush.bf16.msra.mxu1 %v730_v9  ;;  %v734_v27 = vld [vmem:[%s970_s1 + $0x88] sm:$0xff]  ;;  %v725_v33 = vld [vmem:[%s970_s1 + $0x40] sm:$0xff]  ;;  %v752_v46 = vld [vmem:[%s973_s3 + $0x18] sm:$0xff] }
   0xc   :  { %330 = vmatpush.bf16.msra.mxu2 %v738_v10  ;;  %v742_v28 = vld [vmem:[%s970_s1 + $0xc8] sm:$0xff]  ;;  %v733_v36 = vld [vmem:[%s970_s1 + $0x80] sm:$0xff]  ;;  %v102_v39 = vpack.c.b16 %v98_v30, %v98_v30  ;;  %v103_v40 = vpack.c.b16 %v99_v31, %v99_v31  ;;  %v751_v47 = vld [vmem:[%s973_s3 + $0x10] sm:$0xff] }
   0xd   :  { %343 = vmatpush.bf16.msra.mxu3 %v746_v11  ;;  %v27_v29 = vld [vmem:[%s972_s0 + $0x8] sm:$0xff]  ;;  %v741_v37 = vld [vmem:[%s970_s1 + $0xc0] sm:$0xff]  ;;  %v764_v50 = vld [vmem:[%s975_s5 + $0x38] sm:$0xff] }
   0xe   :  { %305 = vmatpush.bf16.msra.mxu0 %v721_v12  ;;  %v100_v34 = vunpack.c.l.b16 %v27_v29  ;;  %v101_v35 = vunpack.c.h.b16 %v27_v29  ;;  %v754_v44 = vld [vmem:[%s973_s3 + $0x28] sm:$0xff]  ;;  %v753_v45 = vld [vmem:[%s973_s3 + $0x20] sm:$0xff]  ;;  %v763_v51 = vld [vmem:[%s975_s5 + $0x30] sm:$0xff] }
   0xf   :  { %318 = vmatpush.bf16.msra.mxu1 %v729_v13  ;;  %v750_v48 = vld [vmem:[%s973_s3 + $0x8] sm:$0xff]  ;;  %v749_v49 = vld [vmem:[%s973_s3] sm:$0xff]  ;;  %v760_v55 = vld [vmem:[%s975_s5 + $0x18] sm:$0xff] }
  0x10   :  { %331 = vmatpush.bf16.msra.mxu2 %v737_v14  ;;  %v104_v41 = vpack.c.b16 %v100_v34, %v100_v34  ;;  %v105_v42 = vpack.c.b16 %v101_v35, %v101_v35  ;;  %v762_v52 = vld [vmem:[%s975_s5 + $0x28] sm:$0xff]  ;;  %v761_v53 = vld [vmem:[%s975_s5 + $0x20] sm:$0xff]  ;;  %v759_v59 = vld [vmem:[%s975_s5 + $0x10] sm:$0xff] }
  0x11   :  { %344 = vmatpush.bf16.msra.mxu3 %v745_v15  ;;  %v765_v54 = vld [vmem:[%s971_s2] ss:$0 sm:$0xff]  ;;  %v758_v7 = vld [vmem:[%s975_s5 + $0x8] sm:$0xff] }
  0x12   :  { %306 = vmatpush.bf16.msra.mxu0 %v720_v16  ;;  %v757_v8 = vld [vmem:[%s975_s5] sm:$0xff] }
  0x13   :  { %319 = vmatpush.bf16.msra.mxu1 %v728_v17  ;;  %v766_v9 = vld [vmem:[%s974_s4] ss:$0 sm:$0xff] }
  0x14   :  { %332 = vmatpush.bf16.msra.mxu2 %v736_v18  ;;  %v767_v15 = vld [vmem:[%s976_s6] ss:$0 sm:$0xff] }
  0x15   :  { %345 = vmatpush.bf16.msra.mxu3 %v744_v19 }
  0x16   :  { %307 = vmatpush.bf16.msra.mxu0 %v719_v20 }
  0x17   :  { %320 = vmatpush.bf16.msra.mxu1 %v727_v21 }
  0x18   :  { %333 = vmatpush.bf16.msra.mxu2 %v735_v22 }
  0x19   :  { %346 = vmatpush.bf16.msra.mxu3 %v743_v23 }
  0x1a   :  { %308 = vmatpush.bf16.msra.mxu0 %v718_v24 }
  0x1b   :  { %321 = vmatpush.bf16.msra.mxu1 %v726_v25 }
  0x1c   :  { %334 = vmatpush.bf16.msra.mxu2 %v734_v27 }
  0x1d   :  { %347 = vmatpush.bf16.msra.mxu3 %v742_v28 }
  0x1e   :  { %309 = vmatpush.bf16.msra.mxu0 %v717_v32 }
  0x1f   :  { %322 = vmatpush.bf16.msra.mxu1 %v725_v33 }
  0x20   :  { %335 = vmatpush.bf16.msra.mxu2 %v733_v36 }
  0x21   :  { %348 = vmatpush.bf16.msra.mxu3 %v741_v37  ;;  %310 = vmatmul.bf16.vlgmr.msra.gmra.mxu0 %v102_v39 }
  0x22   :  { %424 = vmatpush.bf16.msrb.mxu0 %v756_v38  ;;  %323 = vmatmul.bf16.vlgmr.msra.gmra.mxu1 %v103_v40 }
  0x23   :  { %336 = vmatmul.bf16.vlgmr.msra.gmra.mxu2 %v104_v41  ;;  %507 = vmatpush.bf16.msrb.mxu1 %v764_v50 }
  0x24   :  { %349 = vmatmul.bf16.vlgmr.msra.gmra.mxu3 %v105_v42 }
  0x26   :  { %425 = vmatpush.bf16.msrb.mxu0 %v755_v43 }
  0x27   :  { %508 = vmatpush.bf16.msrb.mxu1 %v763_v51 }
  0x2a   :  { %426 = vmatpush.bf16.msrb.mxu0 %v754_v44 }
  0x2b   :  { %509 = vmatpush.bf16.msrb.mxu1 %v762_v52 }
  0x2e   :  { %427 = vmatpush.bf16.msrb.mxu0 %v753_v45 }
  0x2f   :  { %510 = vmatpush.bf16.msrb.mxu1 %v761_v53 }
  0x32   :  { %428 = vmatpush.bf16.msrb.mxu0 %v752_v46 }
  0x33   :  { %511 = vmatpush.bf16.msrb.mxu1 %v760_v55 }
  0x36   :  { %429 = vmatpush.bf16.msrb.mxu0 %v751_v47 }
  0x37   :  { %512 = vmatpush.bf16.msrb.mxu1 %v759_v59 }
  0x3a   :  { %430 = vmatpush.bf16.msrb.mxu0 %v750_v48 }
  0x3b   :  { %513 = vmatpush.bf16.msrb.mxu1 %v758_v7 }
  0x3e   :  { %431 = vmatpush.bf16.msrb.mxu0 %v749_v49 }
  0x3f   :  { %514 = vmatpush.bf16.msrb.mxu1 %v757_v8 }
  0x9e   :  { %v311_v56 = vpop.f32.mrf.mxu0 }
  0x9f   :  { %v324_v57 = vpop.f32.mrf.mxu1  ;;  %v312_v58 = vadd.f32 %v765_v54, %v311_v56 }
  0xa1   :  { %v325_v60 = vadd.f32 %v324_v57, %v312_v58 }
  0xa6   :  { %v337_v61 = vpop.f32.mrf.mxu2  ;;  %v313_v0 = vpop.f32.mrf.mxu0 }
  0xa7   :  { %v350_v62 = vpop.f32.mrf.mxu3  ;;  %v338_v63 = vadd.f32 %v337_v61, %v325_v60  ;;  %v326_v1 = vpop.f32.mrf.mxu1 }
  0xa9   :  { %v351_v2 = vadd.f32 %v350_v62, %v338_v63 }
  0xab   :  { %v354_v3 = vmax.f32 %v351_v2, 0.0 }
  0xad   :  { %v355_v4 = vpack.c.bf16 %v354_v3, %v354_v3 }
  0xae   :  { %v339_v5 = vpop.f32.mrf.mxu2 }
  0xaf   :  { %v352_v6 = vpop.f32.mrf.mxu3  ;;  %432 = vmatmul.bf16.vlgmr.msrb.gmra.mxu0 %v355_v4 }
 0x12c   :  { %v433_v10 = vpop.f32.mrf.mxu0 }
 0x12d   :  { %v434_v11 = vadd.f32 %v766_v9, %v433_v10 }
 0x12f   :  { %v437_v12 = vmax.f32 %v434_v11, 0.0 }
 0x131   :  { %v438_v13 = vpack.c.bf16 %v437_v12, %v437_v12 }
 0x133   :  { %515 = vmatmul.bf16.vlgmr.msrb.gmra.mxu1 %v438_v13 }
 0x134   :  { %v435_v14 = vpop.f32.mrf.mxu0 }
 0x1b0   :  { %v516_v16 = vpop.f32.mrf.mxu1 }
 0x1b1   :  { %v517_v17 = vadd.f32 %v767_v15, %v516_v16 }
 0x1b3   :  { %520 = vst [vmem:[%s977_s7] sm:$0xff] %v517_v17 }
 0x1b8   :  { %v518_v18 = vpop.f32.mrf.mxu1 }

</bundles_post_ra>
